<compile_context>
chip_gen: v5e
topology: v5e:2x2
jax: 0.10.0
libtpu: 0.0.40
codegen_flags: <defaults>
</compile_context>

<pallas_src>
import functools

import jax
import jax.numpy as jnp
from jax.experimental import pallas as pl
from jax.experimental.pallas import tpu as pltpu

LEAKY_SLOPE = 0.01          # nn.LeakyReLU() default
BN_EPS = 1e-5               # nn.BatchNorm2d default
LANE = 128
SUBLANE = 8


def _round_up(x, m):
    return (x + m - 1) // m * m


def _choose_tile(total, target, unit):
    """Largest multiple-of-`unit` divisor of `total` that is <= max(target, unit)."""
    assert total % unit == 0
    best = unit
    d = total // unit
    for f in range(1, d + 1):
        if d % f == 0 and f * unit <= max(target, unit):
            best = f * unit
    return best


def _chip_knobs():
    """Per-generation tiling / VMEM knobs (v5e vs v6e/default vs v7x)."""
    try:
        kind = jax.devices()[0].device_kind.lower()
    except Exception:
        kind = ""
    if ("v5 lite" in kind) or ("v5e" in kind) or ("v5lite" in kind):
        # 16 MiB scoped-VMEM default, 128x128 MXUs, ~820 GB/s HBM.
        return dict(tm=256, tn=128, tk=1024, vmem_limit=24 * 1024 * 1024)
    if ("v7" in kind) or ("tpu7" in kind):
        # 64 MiB physical VMEM per TC: cap well below it for pipeliner headroom.
        # TODO(synk): profile whether "parallel" grid axes shard across the two
        # TensorCores on v7x; if not, switch the M axis to pltpu.CORE_PARALLEL.
        return dict(tm=512, tn=256, tk=2048, vmem_limit=44 * 1024 * 1024)
    # v6e and other chips with 128 MiB VMEM; 2x256x256 MXU -> 256-wide N tile.
    return dict(tm=512, tn=256, tk=2048, vmem_limit=64 * 1024 * 1024)


# ---------------------------------------------------------------------------
# Pallas kernels
# ---------------------------------------------------------------------------
def _conv_stats_kernel(p_ref, w_ref, b_ref, y_ref, s1_ref, s2_ref, acc_ref):
    """K-tiled conv-as-matmul (bf16 in, f32 acc).  At the last K step, add the
    bias, emit the bf16 conv output plus per-(M,N)-tile BN partial sums (f32)."""
    k = pl.program_id(2)

    @pl.when(k == 0)
    def _():
        acc_ref[...] = jnp.zeros_like(acc_ref)

    acc_ref[...] += jnp.dot(p_ref[...], w_ref[...],
                            preferred_element_type=jnp.float32)

    @pl.when(k == pl.num_programs(2) - 1)
    def _():
        acc = acc_ref[...] + b_ref[...]
        y_ref[...] = acc.astype(y_ref.dtype)
        s1 = jnp.sum(acc, axis=0, keepdims=True)
        s2 = jnp.sum(acc * acc, axis=0, keepdims=True)
        # 8 identical sublane rows keep the stats blocks (8,128)-aligned;
        # the wrapper reads every 8th row.
        s1_ref[...] = jnp.broadcast_to(s1, s1_ref.shape)
        s2_ref[...] = jnp.broadcast_to(s2, s2_ref.shape)


def _head_kernel(f_ref, scale_ref, shift_ref, w_ref, b_ref, logit_ref, sig_ref):
    """Last conv layer's folded BN affine + LeakyReLU fused with both Linear
    heads (one lane-dense K-tiled matmul) and a stable in-kernel sigmoid."""
    k = pl.program_id(0)

    @pl.when(k == 0)
    def _():
        logit_ref[...] = jnp.broadcast_to(b_ref[...], logit_ref.shape)

    t = f_ref[...].astype(jnp.float32) * scale_ref[...] + shift_ref[...]
    t = jnp.where(t >= 0.0, t, LEAKY_SLOPE * t)
    logit_ref[...] += jnp.dot(t.astype(jnp.bfloat16), w_ref[...],
                              preferred_element_type=jnp.float32)

    @pl.when(k == pl.num_programs(0) - 1)
    def _():
        sig_ref[...] = 0.5 * (jnp.tanh(0.5 * logit_ref[...]) + 1.0)


# ---------------------------------------------------------------------------
# Wrapper glue
# ---------------------------------------------------------------------------
def _im2col(x, kh, kw, stride, pad, k_pad=0):
    """NHWC -> (N*Hout*Wout, kh*kw*C [+ k_pad zeros]), column order (kh, kw, c).
    The K pad is appended inside the concat so it fuses (no extra full copy)."""
    n, h, w, c = x.shape
    xp = jnp.pad(x, ((0, 0), (pad, pad), (pad, pad), (0, 0)))
    hout = (h + 2 * pad - kh) // stride + 1
    wout = (w + 2 * pad - kw) // stride + 1
    cols = []
    for i in range(kh):
        for j in range(kw):
            cols.append(xp[:, i:i + stride * hout:stride,
                           j:j + stride * wout:stride, :])
    if k_pad:
        cols.append(jnp.zeros((n, hout, wout, k_pad), x.dtype))
    patches = jnp.concatenate(cols, axis=-1)
    return patches.reshape(n * hout * wout, kh * kw * c + k_pad), hout, wout


def conv_layer(x, lp, knobs):
    """Conv2d(5,5,s=2,p=2)+bias as a tiled matmul.  Returns the bf16 pre-BN
    output (N,Ho,Wo,Coutp) and the folded BatchNorm affine (scale, shift)."""
    n = x.shape[0]
    kp, coutp = lp["w"].shape
    k_real = 25 * x.shape[3]
    patches, hout, wout = _im2col(x, 5, 5, 2, 2, k_pad=kp - k_real)
    m_real = patches.shape[0]

    tm = min(knobs["tm"], _round_up(m_real, SUBLANE))
    mp = _round_up(m_real, tm)
    pad_rows = mp - m_real
    if pad_rows:
        # Only when m_real is not a multiple of tm (small late layers / odd
        # batch).  Pad rows are zero -> they contribute exactly the bias to the
        # stats (corrected below); K-pad columns hit zero weight rows.
        patches = jnp.pad(patches, ((0, pad_rows), (0, 0)))
    tn = _choose_tile(coutp, knobs["tn"], LANE)
    tk = _choose_tile(kp, knobs["tk"], LANE)
    grid = (mp // tm, coutp // tn, kp // tk)
    num_m = grid[0]

    cparams = pltpu.CompilerParams(
        dimension_semantics=("parallel", "parallel", "arbitrary"),
        vmem_limit_bytes=knobs["vmem_limit"])

    y, s1, s2 = pl.pallas_call(
        _conv_stats_kernel,
        grid=grid,
        in_specs=[
            pl.BlockSpec((tm, tk), lambda i, j, k: (i, k)),    # patches tile
            pl.BlockSpec((tk, tn), lambda i, j, k: (k, j)),    # weight tile
            pl.BlockSpec((1, tn), lambda i, j, k: (0, j)),     # bias
        ],
        out_specs=(
            pl.BlockSpec((tm, tn), lambda i, j, k: (i, j)),        # bf16 conv out
            pl.BlockSpec((SUBLANE, tn), lambda i, j, k: (i, j)),   # per-tile sum
            pl.BlockSpec((SUBLANE, tn), lambda i, j, k: (i, j)),   # per-tile sumsq
        ),
        out_shape=(
            jax.ShapeDtypeStruct((mp, coutp), jnp.bfloat16),
            jax.ShapeDtypeStruct((num_m * SUBLANE, coutp), jnp.float32),
            jax.ShapeDtypeStruct((num_m * SUBLANE, coutp), jnp.float32),
        ),
        scratch_shapes=[pltpu.VMEM((tm, tn), jnp.float32)],
        compiler_params=cparams,
    )(patches, lp["w"], lp["b"])

    # Tiny JAX combine: exact batch stats over the real M rows.  Zero pad rows
    # contribute exactly the bias (weight K-pad rows are zero) -> subtract it.
    b_vec = lp["b"][0]
    sum1 = s1[::SUBLANE].sum(axis=0) - pad_rows * b_vec
    sum2 = s2[::SUBLANE].sum(axis=0) - pad_rows * (b_vec * b_vec)
    mean = sum1 / m_real
    # TODO(synk): E[x^2]-E[x]^2 in f32 can cancel when |mean| >> std; a shifted
    # two-pass accumulation would be more robust for extreme activations.
    var = jnp.maximum(sum2 / m_real - mean * mean, 0.0)   # biased var (training BN)
    scale = lp["gamma"] * jax.lax.rsqrt(var + BN_EPS)
    shift = lp["beta"] - mean * scale

    y = y[:m_real].reshape(n, hout, wout, coutp)
    return y, scale, shift


def heads_fused(feat, scale_f, shift_f, w_head, b_head, knobs):
    """BN(last layer) + LeakyReLU fused with both Linear heads (K-tiled) + sigmoid."""
    n, k_head = feat.shape
    ncols_p = w_head.shape[1]
    tk = _choose_tile(k_head, knobs["tk"], LANE)
    grid = (k_head // tk,)
    logits, sig = pl.pallas_call(
        _head_kernel,
        grid=grid,
        in_specs=[
            pl.BlockSpec((n, tk), lambda k: (0, k)),        # bf16 features
            pl.BlockSpec((1, tk), lambda k: (0, k)),        # folded BN scale
            pl.BlockSpec((1, tk), lambda k: (0, k)),        # folded BN shift
            pl.BlockSpec((tk, ncols_p), lambda k: (k, 0)),  # fused head weights
            pl.BlockSpec((1, ncols_p), lambda k: (0, 0)),   # fused head bias
        ],
        out_specs=(
            pl.BlockSpec((n, ncols_p), lambda k: (0, 0)),
            pl.BlockSpec((n, ncols_p), lambda k: (0, 0)),
        ),
        out_shape=(jax.ShapeDtypeStruct((n, ncols_p), jnp.float32),
                   jax.ShapeDtypeStruct((n, ncols_p), jnp.float32)),
        compiler_params=pltpu.CompilerParams(
            dimension_semantics=("arbitrary",),
            vmem_limit_bytes=knobs["vmem_limit"]),
    )(feat, scale_f, shift_f, w_head, b_head)
    return logits, sig


def discriminator_forward(x_nchw, prep, *, cat_num, cout_reals, knobs):
    x = jnp.transpose(x_nchw, (0, 2, 3, 1)).astype(jnp.bfloat16)   # NCHW -> NHWC
    n_layers = len(prep["convs"])
    y_last = scale_last = shift_last = None
    for li, lp in enumerate(prep["convs"]):
        y, scale, shift = conv_layer(x, lp, knobs)
        if li + 1 < n_layers:
            c = cout_reals[li]
            # Folded BN affine + LeakyReLU applied on the real channels and
            # fused (by XLA) into the next layer's im2col gather -- no separate
            # elementwise pass, no extra activation round-trip.
            t = y[..., :c].astype(jnp.float32) * scale[:c] + shift[:c]
            x = jnp.where(t >= 0.0, t, LEAKY_SLOPE * t).astype(jnp.bfloat16)
        else:
            y_last, scale_last, shift_last = y, scale, shift

    n, ho, wo, coutp = y_last.shape
    feat = y_last.reshape(n, ho * wo * coutp)       # NHWC(-padded) flatten
    # Broadcast the last layer's per-channel affine to the (h, w, c) flatten order.
    scale_f = jnp.tile(scale_last, ho * wo).reshape(1, -1)
    shift_f = jnp.tile(shift_last, ho * wo).reshape(1, -1)
    logits, sig = heads_fused(feat, scale_f, shift_f,
                              prep["w_head"], prep["b_head"], knobs)
    rf = logits[:, 0:1]
    cat = logits[:, 1:1 + cat_num]
    return sig[:, 0:1], rf, cat


# ---------------------------------------------------------------------------
# Parameters (PyTorch-like layout) and one-time kernel-layout preparation
# ---------------------------------------------------------------------------
def init_params(key, in_channels, discriminator_dim, img_size, cat_num):
    """Conv weights in HWIO; head weight rows ordered by NCHW flatten (PyTorch)."""
    params = {"convs": []}
    cin, cout = in_channels, discriminator_dim
    for _ in range(4):
        key, k1, k2, k3, k4 = jax.random.split(key, 5)
        params["convs"].append(dict(
            w=jax.random.normal(k1, (5, 5, cin, cout), jnp.float32) * 0.05,
            b=jax.random.normal(k2, (cout,), jnp.float32) * 0.05,
            gamma=1.0 + 0.1 * jax.random.normal(k3, (cout,), jnp.float32),
            beta=0.1 * jax.random.normal(k4, (cout,), jnp.float32),
        ))
        cin, cout = cout, cout * 2
    out_dim = (img_size // 16) ** 2 * discriminator_dim * 8
    key, k1, k2, k3, k4 = jax.random.split(key, 5)
    params["w_rf"] = jax.random.normal(k1, (out_dim, 1), jnp.float32) * 0.05
    params["b_rf"] = jax.random.normal(k2, (1,), jnp.float32) * 0.05
    params["w_cat"] = jax.random.normal(k3, (out_dim, cat_num), jnp.float32) * 0.05
    params["b_cat"] = jax.random.normal(k4, (cat_num,), jnp.float32) * 0.05
    return params


def prepare_params(params, img_size, cat_num):
    """One-time: reshape conv weights to (25*Cin_real, Cout) matmul form, pad
    K and Cout to 128 lanes with zeros, cast matmul weights to bf16, and fuse /
    row-permute the head weights from NCHW flatten order to the NHWC(-padded)
    flatten order so the forward never transposes the feature tensor."""
    prep = {"convs": []}
    for layer in params["convs"]:
        kh, kw, cin_r, cout_r = layer["w"].shape
        cout_p = _round_up(cout_r, LANE)
        k_real = kh * kw * cin_r
        k_p = _round_up(k_real, LANE)
        w_mat = jnp.pad(layer["w"].reshape(k_real, cout_r),
                        ((0, k_p - k_real), (0, cout_p - cout_r)))
        prep["convs"].append(dict(
            w=w_mat.astype(jnp.bfloat16),
            b=jnp.pad(layer["b"], (0, cout_p - cout_r)).reshape(1, cout_p)
                .astype(jnp.float32),
            gamma=jnp.pad(layer["gamma"], (0, cout_p - cout_r)).astype(jnp.float32),
            beta=jnp.pad(layer["beta"], (0, cout_p - cout_r)).astype(jnp.float32),
        ))

    hw = img_size // 16
    c_last = params["convs"][-1]["w"].shape[3]
    cp_last = _round_up(c_last, LANE)
    ncols = 1 + cat_num
    ncols_p = _round_up(ncols, LANE)
    w_all = jnp.concatenate([params["w_rf"], params["w_cat"]], axis=1)  # (C*H*W, 1+cat)
    w_all = w_all.reshape(c_last, hw, hw, ncols).transpose(1, 2, 0, 3)  # -> (H, W, C, .)
    w_all = jnp.pad(w_all, ((0, 0), (0, 0), (0, cp_last - c_last),
                            (0, ncols_p - ncols)))
    prep["w_head"] = w_all.reshape(hw * hw * cp_last, ncols_p).astype(jnp.bfloat16)
    b_all = jnp.concatenate([params["b_rf"], params["b_cat"]])
    prep["b_head"] = jnp.pad(b_all, (0, ncols_p - ncols)).reshape(1, ncols_p) \
        .astype(jnp.float32)
    return prep


# ---------------------------------------------------------------------------
# Pure-JAX reference (same math and same precision policy, no Pallas)
# ---------------------------------------------------------------------------
def reference_forward(x_nchw, params, cat_num):
    del cat_num
    x = jnp.transpose(x_nchw, (0, 2, 3, 1)).astype(jnp.bfloat16)
    n = x.shape[0]
    for layer in params["convs"]:
        kh, kw, cin, cout = layer["w"].shape
        p, ho, wo = _im2col(x, kh, kw, 2, 2)
        w_mat = layer["w"].reshape(kh * kw * cin, cout).astype(jnp.bfloat16)
        y = jnp.dot(p, w_mat, preferred_element_type=jnp.float32) + layer["b"]
        mean = jnp.mean(y, axis=0, keepdims=True)
        var = jnp.mean(jnp.square(y - mean), axis=0, keepdims=True)
        # Mirror the kernel's bf16 storage of the pre-BN conv activation
        # (stats stay f32; normalization is applied to the bf16-rounded values).
        y_q = y.astype(jnp.bfloat16).astype(jnp.float32)
        z = (y_q - mean) * jax.lax.rsqrt(var + BN_EPS) * layer["gamma"] + layer["beta"]
        z = jnp.where(z >= 0, z, LEAKY_SLOPE * z)
        x = z.astype(jnp.bfloat16).reshape(n, ho, wo, cout)
    feat = jnp.transpose(x, (0, 3, 1, 2)).reshape(n, -1)     # NCHW flatten (PyTorch)
    rf = jnp.dot(feat, params["w_rf"].astype(jnp.bfloat16),
                 preferred_element_type=jnp.float32) + params["b_rf"]
    cat = jnp.dot(feat, params["w_cat"].astype(jnp.bfloat16),
                  preferred_element_type=jnp.float32) + params["b_cat"]
    return jax.nn.sigmoid(rf), rf, cat


if __name__ == "__main__":
    key = jax.random.PRNGKey(0)
    key, kx, kp = jax.random.split(key, 3)

    batch, in_channels, img_size = 3, 3, 32
    cat_num, disc_dim = 6, 8     # small discriminator_dim for a small test

    x = jax.random.normal(kx, (batch, in_channels, img_size, img_size), jnp.float32)
    params = init_params(kp, in_channels, disc_dim, img_size, cat_num)
    prep = prepare_params(params, img_size, cat_num)
    cout_reals = tuple(int(l["w"].shape[3]) for l in params["convs"])
    knobs = _chip_knobs()

    fwd = jax.jit(functools.partial(discriminator_forward, cat_num=cat_num,
                                    cout_reals=cout_reals, knobs=knobs))
    sig, rf, cat = jax.block_until_ready(fwd(x, prep))

    ref_sig, ref_rf, ref_cat = reference_forward(x, params, cat_num)
    assert sig.shape == (batch, 1) and rf.shape == (batch, 1)
    assert cat.shape == (batch, cat_num)
    for got, want in ((sig, ref_sig), (rf, ref_rf), (cat, ref_cat)):
        assert jnp.allclose(got, jnp.asarray(want, jnp.float32),
                            rtol=2e-2, atol=2e-2), "mismatch vs reference"

    print("KERNEL_OK")
</pallas_src>

<mosaic_0001>
module attributes {stable_mosaic.version = 11 : i64} {
  func.func @_conv_stats_kernel(%arg0: i32, %arg1: i32, %arg2: i32, %arg3: memref<512x128xbf16, #tpu.memory_space<vmem>>, %arg4: memref<128x128xbf16, #tpu.memory_space<vmem>>, %arg5: memref<1x128xf32, #tpu.memory_space<vmem>>, %arg6: memref<512x128xbf16, #tpu.memory_space<vmem>>, %arg7: memref<8x128xf32, #tpu.memory_space<vmem>>, %arg8: memref<8x128xf32, #tpu.memory_space<vmem>>, %arg9: memref<512x128xf32, #tpu.memory_space<vmem>>) attributes {dimension_semantics = [#tpu.dimension_semantics<parallel>, #tpu.dimension_semantics<parallel>, #tpu.dimension_semantics<arbitrary>], iteration_bounds = array<i64: 2, 1, 1>, scalar_prefetch = 0 : i64, scratch_operands = 1 : i64, tpu.core_type = #tpu.core_type<tc>, window_params = [{transform_indices = @transform_0, window_bounds = array<i64: 512, 128>}, {transform_indices = @transform_1, window_bounds = array<i64: 128, 128>}, {transform_indices = @transform_2, window_bounds = array<i64: 1, 128>}, {transform_indices = @transform_3, window_bounds = array<i64: 512, 128>}, {transform_indices = @transform_4, window_bounds = array<i64: 8, 128>}, {transform_indices = @transform_5, window_bounds = array<i64: 8, 128>}]} {
    %c0_i32 = arith.constant 0 : i32
    %0 = arith.cmpi eq, %arg2, %c0_i32 : i32
    %1 = arith.extui %0 : i1 to i32
    %c0_i32_0 = arith.constant 0 : i32
    %2 = arith.cmpi ne, %1, %c0_i32_0 : i32
    scf.if %2 {
      %cst_10 = arith.constant 0.000000e+00 : f32
      %12 = vector.broadcast %cst_10 : f32 to vector<512x128xf32>
      %c0_11 = arith.constant 0 : index
      %c0_12 = arith.constant 0 : index
      %13 = vector.load %arg9[%c0_11, %c0_12] : memref<512x128xf32, #tpu.memory_space<vmem>>, vector<512x128xf32>
      tpu.vector_store %arg9[%c0_11, %c0_12], %12 {strides = array<i32>} : memref<512x128xf32, #tpu.memory_space<vmem>>, vector<512x128xf32>,
    } else {
    }
    %c0 = arith.constant 0 : index
    %c0_1 = arith.constant 0 : index
    %3 = vector.load %arg9[%c0, %c0_1] : memref<512x128xf32, #tpu.memory_space<vmem>>, vector<512x128xf32>
    %c0_2 = arith.constant 0 : index
    %c0_3 = arith.constant 0 : index
    %4 = vector.load %arg3[%c0_2, %c0_3] : memref<512x128xbf16, #tpu.memory_space<vmem>>, vector<512x128xbf16>
    %c0_4 = arith.constant 0 : index
    %c0_5 = arith.constant 0 : index
    %5 = vector.load %arg4[%c0_4, %c0_5] : memref<128x128xbf16, #tpu.memory_space<vmem>>, vector<128x128xbf16>
    %cst = arith.constant dense<0.000000e+00> : vector<512x128xf32>
    %6 = tpu.matmul %4, %5, %cst {dimension_numbers = #tpu.dot_dimension_numbers<[1], [0], [0], [1], [0, 0, 1, 1], [], []>} : vector<512x128xbf16>, vector<128x128xbf16>, vector<512x128xf32> -> vector<512x128xf32>
    %7 = arith.addf %3, %6 : vector<512x128xf32>
    %c0_6 = arith.constant 0 : index
    %c0_7 = arith.constant 0 : index
    %8 = vector.load %arg9[%c0_6, %c0_7] : memref<512x128xf32, #tpu.memory_space<vmem>>, vector<512x128xf32>
    tpu.vector_store %arg9[%c0_6, %c0_7], %7 {strides = array<i32>} : memref<512x128xf32, #tpu.memory_space<vmem>>, vector<512x128xf32>,
    %c0_i32_8 = arith.constant 0 : i32
    %9 = arith.cmpi eq, %arg2, %c0_i32_8 : i32
    %10 = arith.extui %9 : i1 to i32
    %c0_i32_9 = arith.constant 0 : i32
    %11 = arith.cmpi ne, %10, %c0_i32_9 : i32
    scf.if %11 {
      %c0_10 = arith.constant 0 : index
      %c0_11 = arith.constant 0 : index
      %12 = vector.load %arg9[%c0_10, %c0_11] : memref<512x128xf32, #tpu.memory_space<vmem>>, vector<512x128xf32>
      %c0_12 = arith.constant 0 : index
      %c0_13 = arith.constant 0 : index
      %13 = vector.load %arg5[%c0_12, %c0_13] : memref<1x128xf32, #tpu.memory_space<vmem>>, vector<1x128xf32>
      %14 = vector.broadcast %13 : vector<1x128xf32> to vector<512x128xf32>
      %15 = arith.addf %12, %14 : vector<512x128xf32>
      %16 = arith.truncf %15 : vector<512x128xf32> to vector<512x128xbf16>
      %c0_14 = arith.constant 0 : index
      %c0_15 = arith.constant 0 : index
      %17 = vector.load %arg6[%c0_14, %c0_15] : memref<512x128xbf16, #tpu.memory_space<vmem>>, vector<512x128xbf16>
      tpu.vector_store %arg6[%c0_14, %c0_15], %16 {strides = array<i32>} : memref<512x128xbf16, #tpu.memory_space<vmem>>, vector<512x128xbf16>,
      %cst_16 = arith.constant dense<0.000000e+00> : vector<128xf32>
      %18 = vector.multi_reduction <add>, %15, %cst_16 [0] : vector<512x128xf32> to vector<128xf32>
      %19 = vector.shape_cast %18 : vector<128xf32> to vector<1x128xf32>
      %20 = arith.mulf %15, %15 : vector<512x128xf32>
      %cst_17 = arith.constant dense<0.000000e+00> : vector<128xf32>
      %21 = vector.multi_reduction <add>, %20, %cst_17 [0] : vector<512x128xf32> to vector<128xf32>
      %22 = vector.shape_cast %21 : vector<128xf32> to vector<1x128xf32>
      %23 = vector.shape_cast %19 : vector<1x128xf32> to vector<1x128xf32>
      %24 = vector.broadcast %23 : vector<1x128xf32> to vector<8x128xf32>
      %c0_18 = arith.constant 0 : index
      %c0_19 = arith.constant 0 : index
      %25 = vector.load %arg7[%c0_18, %c0_19] : memref<8x128xf32, #tpu.memory_space<vmem>>, vector<8x128xf32>
      tpu.vector_store %arg7[%c0_18, %c0_19], %24 {strides = array<i32>} : memref<8x128xf32, #tpu.memory_space<vmem>>, vector<8x128xf32>,
      %26 = vector.shape_cast %22 : vector<1x128xf32> to vector<1x128xf32>
      %27 = vector.broadcast %26 : vector<1x128xf32> to vector<8x128xf32>
      %c0_20 = arith.constant 0 : index
      %c0_21 = arith.constant 0 : index
      %28 = vector.load %arg8[%c0_20, %c0_21] : memref<8x128xf32, #tpu.memory_space<vmem>>, vector<8x128xf32>
      tpu.vector_store %arg8[%c0_20, %c0_21], %27 {strides = array<i32>} : memref<8x128xf32, #tpu.memory_space<vmem>>, vector<8x128xf32>,
    } else {
    }
    return
  }
  func.func @transform_0(%arg0: i32, %arg1: i32, %arg2: i32) -> (i32, i32) {
    %c0_i32 = arith.constant 0 : i32
    return %arg0, %arg2 : i32, i32
  }
  func.func @transform_1(%arg0: i32, %arg1: i32, %arg2: i32) -> (i32, i32) {
    %c0_i32 = arith.constant 0 : i32
    return %arg2, %arg1 : i32, i32
  }
  func.func @transform_2(%arg0: i32, %arg1: i32, %arg2: i32) -> (i32, i32) {
    %c0_i32 = arith.constant 0 : i32
    %c0_i32_0 = arith.constant 0 : i32
    return %c0_i32, %arg1 : i32, i32
  }
  func.func @transform_3(%arg0: i32, %arg1: i32, %arg2: i32) -> (i32, i32) {
    %c0_i32 = arith.constant 0 : i32
    return %arg0, %arg1 : i32, i32
  }
  func.func @transform_4(%arg0: i32, %arg1: i32, %arg2: i32) -> (i32, i32) {
    %c0_i32 = arith.constant 0 : i32
    return %arg0, %arg1 : i32, i32
  }
  func.func @transform_5(%arg0: i32, %arg1: i32, %arg2: i32) -> (i32, i32) {
    %c0_i32 = arith.constant 0 : i32
    return %arg0, %arg1 : i32, i32
  }
}

module attributes {stable_mosaic.version = 11 : i64} {
  func.func @_conv_stats_kernel(%arg0: i32, %arg1: i32, %arg2: i32, %arg3: memref<192x256xbf16, #tpu.memory_space<vmem>>, %arg4: memref<256x128xbf16, #tpu.memory_space<vmem>>, %arg5: memref<1x128xf32, #tpu.memory_space<vmem>>, %arg6: memref<192x128xbf16, #tpu.memory_space<vmem>>, %arg7: memref<8x128xf32, #tpu.memory_space<vmem>>, %arg8: memref<8x128xf32, #tpu.memory_space<vmem>>, %arg9: memref<192x128xf32, #tpu.memory_space<vmem>>) attributes {dimension_semantics = [#tpu.dimension_semantics<parallel>, #tpu.dimension_semantics<parallel>, #tpu.dimension_semantics<arbitrary>], iteration_bounds = array<i64: 1, 1, 1>, scalar_prefetch = 0 : i64, scratch_operands = 1 : i64, tpu.core_type = #tpu.core_type<tc>, window_params = [{transform_indices = @transform_0, window_bounds = array<i64: 192, 256>}, {transform_indices = @transform_1, window_bounds = array<i64: 256, 128>}, {transform_indices = @transform_2, window_bounds = array<i64: 1, 128>}, {transform_indices = @transform_3, window_bounds = array<i64: 192, 128>}, {transform_indices = @transform_4, window_bounds = array<i64: 8, 128>}, {transform_indices = @transform_5, window_bounds = array<i64: 8, 128>}]} {
    %c0_i32 = arith.constant 0 : i32
    %0 = arith.cmpi eq, %arg2, %c0_i32 : i32
    %1 = arith.extui %0 : i1 to i32
    %c0_i32_0 = arith.constant 0 : i32
    %2 = arith.cmpi ne, %1, %c0_i32_0 : i32
    scf.if %2 {
      %cst_10 = arith.constant 0.000000e+00 : f32
      %12 = vector.broadcast %cst_10 : f32 to vector<192x128xf32>
      %c0_11 = arith.constant 0 : index
      %c0_12 = arith.constant 0 : index
      %13 = vector.load %arg9[%c0_11, %c0_12] : memref<192x128xf32, #tpu.memory_space<vmem>>, vector<192x128xf32>
      tpu.vector_store %arg9[%c0_11, %c0_12], %12 {strides = array<i32>} : memref<192x128xf32, #tpu.memory_space<vmem>>, vector<192x128xf32>,
    } else {
    }
    %c0 = arith.constant 0 : index
    %c0_1 = arith.constant 0 : index
    %3 = vector.load %arg9[%c0, %c0_1] : memref<192x128xf32, #tpu.memory_space<vmem>>, vector<192x128xf32>
    %c0_2 = arith.constant 0 : index
    %c0_3 = arith.constant 0 : index
    %4 = vector.load %arg3[%c0_2, %c0_3] : memref<192x256xbf16, #tpu.memory_space<vmem>>, vector<192x256xbf16>
    %c0_4 = arith.constant 0 : index
    %c0_5 = arith.constant 0 : index
    %5 = vector.load %arg4[%c0_4, %c0_5] : memref<256x128xbf16, #tpu.memory_space<vmem>>, vector<256x128xbf16>
    %cst = arith.constant dense<0.000000e+00> : vector<192x128xf32>
    %6 = tpu.matmul %4, %5, %cst {dimension_numbers = #tpu.dot_dimension_numbers<[1], [0], [0], [1], [0, 0, 1, 1], [], []>} : vector<192x256xbf16>, vector<256x128xbf16>, vector<192x128xf32> -> vector<192x128xf32>
    %7 = arith.addf %3, %6 : vector<192x128xf32>
    %c0_6 = arith.constant 0 : index
    %c0_7 = arith.constant 0 : index
    %8 = vector.load %arg9[%c0_6, %c0_7] : memref<192x128xf32, #tpu.memory_space<vmem>>, vector<192x128xf32>
    tpu.vector_store %arg9[%c0_6, %c0_7], %7 {strides = array<i32>} : memref<192x128xf32, #tpu.memory_space<vmem>>, vector<192x128xf32>,
    %c0_i32_8 = arith.constant 0 : i32
    %9 = arith.cmpi eq, %arg2, %c0_i32_8 : i32
    %10 = arith.extui %9 : i1 to i32
    %c0_i32_9 = arith.constant 0 : i32
    %11 = arith.cmpi ne, %10, %c0_i32_9 : i32
    scf.if %11 {
      %c0_10 = arith.constant 0 : index
      %c0_11 = arith.constant 0 : index
      %12 = vector.load %arg9[%c0_10, %c0_11] : memref<192x128xf32, #tpu.memory_space<vmem>>, vector<192x128xf32>
      %c0_12 = arith.constant 0 : index
      %c0_13 = arith.constant 0 : index
      %13 = vector.load %arg5[%c0_12, %c0_13] : memref<1x128xf32, #tpu.memory_space<vmem>>, vector<1x128xf32>
      %14 = vector.broadcast %13 : vector<1x128xf32> to vector<192x128xf32>
      %15 = arith.addf %12, %14 : vector<192x128xf32>
      %16 = arith.truncf %15 : vector<192x128xf32> to vector<192x128xbf16>
      %c0_14 = arith.constant 0 : index
      %c0_15 = arith.constant 0 : index
      %17 = vector.load %arg6[%c0_14, %c0_15] : memref<192x128xbf16, #tpu.memory_space<vmem>>, vector<192x128xbf16>
      tpu.vector_store %arg6[%c0_14, %c0_15], %16 {strides = array<i32>} : memref<192x128xbf16, #tpu.memory_space<vmem>>, vector<192x128xbf16>,
      %cst_16 = arith.constant dense<0.000000e+00> : vector<128xf32>
      %18 = vector.multi_reduction <add>, %15, %cst_16 [0] : vector<192x128xf32> to vector<128xf32>
      %19 = vector.shape_cast %18 : vector<128xf32> to vector<1x128xf32>
      %20 = arith.mulf %15, %15 : vector<192x128xf32>
      %cst_17 = arith.constant dense<0.000000e+00> : vector<128xf32>
      %21 = vector.multi_reduction <add>, %20, %cst_17 [0] : vector<192x128xf32> to vector<128xf32>
      %22 = vector.shape_cast %21 : vector<128xf32> to vector<1x128xf32>
      %23 = vector.shape_cast %19 : vector<1x128xf32> to vector<1x128xf32>
      %24 = vector.broadcast %23 : vector<1x128xf32> to vector<8x128xf32>
      %c0_18 = arith.constant 0 : index
      %c0_19 = arith.constant 0 : index
      %25 = vector.load %arg7[%c0_18, %c0_19] : memref<8x128xf32, #tpu.memory_space<vmem>>, vector<8x128xf32>
      tpu.vector_store %arg7[%c0_18, %c0_19], %24 {strides = array<i32>} : memref<8x128xf32, #tpu.memory_space<vmem>>, vector<8x128xf32>,
      %26 = vector.shape_cast %22 : vector<1x128xf32> to vector<1x128xf32>
      %27 = vector.broadcast %26 : vector<1x128xf32> to vector<8x128xf32>
      %c0_20 = arith.constant 0 : index
      %c0_21 = arith.constant 0 : index
      %28 = vector.load %arg8[%c0_20, %c0_21] : memref<8x128xf32, #tpu.memory_space<vmem>>, vector<8x128xf32>
      tpu.vector_store %arg8[%c0_20, %c0_21], %27 {strides = array<i32>} : memref<8x128xf32, #tpu.memory_space<vmem>>, vector<8x128xf32>,
    } else {
    }
    return
  }
  func.func @transform_0(%arg0: i32, %arg1: i32, %arg2: i32) -> (i32, i32) {
    %c0_i32 = arith.constant 0 : i32
    return %arg0, %arg2 : i32, i32
  }
  func.func @transform_1(%arg0: i32, %arg1: i32, %arg2: i32) -> (i32, i32) {
    %c0_i32 = arith.constant 0 : i32
    return %arg2, %arg1 : i32, i32
  }
  func.func @transform_2(%arg0: i32, %arg1: i32, %arg2: i32) -> (i32, i32) {
    %c0_i32 = arith.constant 0 : i32
    %c0_i32_0 = arith.constant 0 : i32
    return %c0_i32, %arg1 : i32, i32
  }
  func.func @transform_3(%arg0: i32, %arg1: i32, %arg2: i32) -> (i32, i32) {
    %c0_i32 = arith.constant 0 : i32
    return %arg0, %arg1 : i32, i32
  }
  func.func @transform_4(%arg0: i32, %arg1: i32, %arg2: i32) -> (i32, i32) {
    %c0_i32 = arith.constant 0 : i32
    return %arg0, %arg1 : i32, i32
  }
  func.func @transform_5(%arg0: i32, %arg1: i32, %arg2: i32) -> (i32, i32) {
    %c0_i32 = arith.constant 0 : i32
    return %arg0, %arg1 : i32, i32
  }
}

module attributes {stable_mosaic.version = 11 : i64} {
  func.func @_conv_stats_kernel(%arg0: i32, %arg1: i32, %arg2: i32, %arg3: memref<48x512xbf16, #tpu.memory_space<vmem>>, %arg4: memref<512x128xbf16, #tpu.memory_space<vmem>>, %arg5: memref<1x128xf32, #tpu.memory_space<vmem>>, %arg6: memref<48x128xbf16, #tpu.memory_space<vmem>>, %arg7: memref<8x128xf32, #tpu.memory_space<vmem>>, %arg8: memref<8x128xf32, #tpu.memory_space<vmem>>, %arg9: memref<48x128xf32, #tpu.memory_space<vmem>>) attributes {dimension_semantics = [#tpu.dimension_semantics<parallel>, #tpu.dimension_semantics<parallel>, #tpu.dimension_semantics<arbitrary>], iteration_bounds = array<i64: 1, 1, 1>, scalar_prefetch = 0 : i64, scratch_operands = 1 : i64, tpu.core_type = #tpu.core_type<tc>, window_params = [{transform_indices = @transform_0, window_bounds = array<i64: 48, 512>}, {transform_indices = @transform_1, window_bounds = array<i64: 512, 128>}, {transform_indices = @transform_2, window_bounds = array<i64: 1, 128>}, {transform_indices = @transform_3, window_bounds = array<i64: 48, 128>}, {transform_indices = @transform_4, window_bounds = array<i64: 8, 128>}, {transform_indices = @transform_5, window_bounds = array<i64: 8, 128>}]} {
    %c0_i32 = arith.constant 0 : i32
    %0 = arith.cmpi eq, %arg2, %c0_i32 : i32
    %1 = arith.extui %0 : i1 to i32
    %c0_i32_0 = arith.constant 0 : i32
    %2 = arith.cmpi ne, %1, %c0_i32_0 : i32
    scf.if %2 {
      %cst_10 = arith.constant 0.000000e+00 : f32
      %12 = vector.broadcast %cst_10 : f32 to vector<48x128xf32>
      %c0_11 = arith.constant 0 : index
      %c0_12 = arith.constant 0 : index
      %13 = vector.load %arg9[%c0_11, %c0_12] : memref<48x128xf32, #tpu.memory_space<vmem>>, vector<48x128xf32>
      tpu.vector_store %arg9[%c0_11, %c0_12], %12 {strides = array<i32>} : memref<48x128xf32, #tpu.memory_space<vmem>>, vector<48x128xf32>,
    } else {
    }
    %c0 = arith.constant 0 : index
    %c0_1 = arith.constant 0 : index
    %3 = vector.load %arg9[%c0, %c0_1] : memref<48x128xf32, #tpu.memory_space<vmem>>, vector<48x128xf32>
    %c0_2 = arith.constant 0 : index
    %c0_3 = arith.constant 0 : index
    %4 = vector.load %arg3[%c0_2, %c0_3] : memref<48x512xbf16, #tpu.memory_space<vmem>>, vector<48x512xbf16>
    %c0_4 = arith.constant 0 : index
    %c0_5 = arith.constant 0 : index
    %5 = vector.load %arg4[%c0_4, %c0_5] : memref<512x128xbf16, #tpu.memory_space<vmem>>, vector<512x128xbf16>
    %cst = arith.constant dense<0.000000e+00> : vector<48x128xf32>
    %6 = tpu.matmul %4, %5, %cst {dimension_numbers = #tpu.dot_dimension_numbers<[1], [0], [0], [1], [0, 0, 1, 1], [], []>} : vector<48x512xbf16>, vector<512x128xbf16>, vector<48x128xf32> -> vector<48x128xf32>
    %7 = arith.addf %3, %6 : vector<48x128xf32>
    %c0_6 = arith.constant 0 : index
    %c0_7 = arith.constant 0 : index
    %8 = vector.load %arg9[%c0_6, %c0_7] : memref<48x128xf32, #tpu.memory_space<vmem>>, vector<48x128xf32>
    tpu.vector_store %arg9[%c0_6, %c0_7], %7 {strides = array<i32>} : memref<48x128xf32, #tpu.memory_space<vmem>>, vector<48x128xf32>,
    %c0_i32_8 = arith.constant 0 : i32
    %9 = arith.cmpi eq, %arg2, %c0_i32_8 : i32
    %10 = arith.extui %9 : i1 to i32
    %c0_i32_9 = arith.constant 0 : i32
    %11 = arith.cmpi ne, %10, %c0_i32_9 : i32
    scf.if %11 {
      %c0_10 = arith.constant 0 : index
      %c0_11 = arith.constant 0 : index
      %12 = vector.load %arg9[%c0_10, %c0_11] : memref<48x128xf32, #tpu.memory_space<vmem>>, vector<48x128xf32>
      %c0_12 = arith.constant 0 : index
      %c0_13 = arith.constant 0 : index
      %13 = vector.load %arg5[%c0_12, %c0_13] : memref<1x128xf32, #tpu.memory_space<vmem>>, vector<1x128xf32>
      %14 = vector.broadcast %13 : vector<1x128xf32> to vector<48x128xf32>
      %15 = arith.addf %12, %14 : vector<48x128xf32>
      %16 = arith.truncf %15 : vector<48x128xf32> to vector<48x128xbf16>
      %c0_14 = arith.constant 0 : index
      %c0_15 = arith.constant 0 : index
      %17 = vector.load %arg6[%c0_14, %c0_15] : memref<48x128xbf16, #tpu.memory_space<vmem>>, vector<48x128xbf16>
      tpu.vector_store %arg6[%c0_14, %c0_15], %16 {strides = array<i32>} : memref<48x128xbf16, #tpu.memory_space<vmem>>, vector<48x128xbf16>,
      %cst_16 = arith.constant dense<0.000000e+00> : vector<128xf32>
      %18 = vector.multi_reduction <add>, %15, %cst_16 [0] : vector<48x128xf32> to vector<128xf32>
      %19 = vector.shape_cast %18 : vector<128xf32> to vector<1x128xf32>
      %20 = arith.mulf %15, %15 : vector<48x128xf32>
      %cst_17 = arith.constant dense<0.000000e+00> : vector<128xf32>
      %21 = vector.multi_reduction <add>, %20, %cst_17 [0] : vector<48x128xf32> to vector<128xf32>
      %22 = vector.shape_cast %21 : vector<128xf32> to vector<1x128xf32>
      %23 = vector.shape_cast %19 : vector<1x128xf32> to vector<1x128xf32>
      %24 = vector.broadcast %23 : vector<1x128xf32> to vector<8x128xf32>
      %c0_18 = arith.constant 0 : index
      %c0_19 = arith.constant 0 : index
      %25 = vector.load %arg7[%c0_18, %c0_19] : memref<8x128xf32, #tpu.memory_space<vmem>>, vector<8x128xf32>
      tpu.vector_store %arg7[%c0_18, %c0_19], %24 {strides = array<i32>} : memref<8x128xf32, #tpu.memory_space<vmem>>, vector<8x128xf32>,
      %26 = vector.shape_cast %22 : vector<1x128xf32> to vector<1x128xf32>
      %27 = vector.broadcast %26 : vector<1x128xf32> to vector<8x128xf32>
      %c0_20 = arith.constant 0 : index
      %c0_21 = arith.constant 0 : index
      %28 = vector.load %arg8[%c0_20, %c0_21] : memref<8x128xf32, #tpu.memory_space<vmem>>, vector<8x128xf32>
      tpu.vector_store %arg8[%c0_20, %c0_21], %27 {strides = array<i32>} : memref<8x128xf32, #tpu.memory_space<vmem>>, vector<8x128xf32>,
    } else {
    }
    return
  }
  func.func @transform_0(%arg0: i32, %arg1: i32, %arg2: i32) -> (i32, i32) {
    %c0_i32 = arith.constant 0 : i32
    return %arg0, %arg2 : i32, i32
  }
  func.func @transform_1(%arg0: i32, %arg1: i32, %arg2: i32) -> (i32, i32) {
    %c0_i32 = arith.constant 0 : i32
    return %arg2, %arg1 : i32, i32
  }
  func.func @transform_2(%arg0: i32, %arg1: i32, %arg2: i32) -> (i32, i32) {
    %c0_i32 = arith.constant 0 : i32
    %c0_i32_0 = arith.constant 0 : i32
    return %c0_i32, %arg1 : i32, i32
  }
  func.func @transform_3(%arg0: i32, %arg1: i32, %arg2: i32) -> (i32, i32) {
    %c0_i32 = arith.constant 0 : i32
    return %arg0, %arg1 : i32, i32
  }
  func.func @transform_4(%arg0: i32, %arg1: i32, %arg2: i32) -> (i32, i32) {
    %c0_i32 = arith.constant 0 : i32
    return %arg0, %arg1 : i32, i32
  }
  func.func @transform_5(%arg0: i32, %arg1: i32, %arg2: i32) -> (i32, i32) {
    %c0_i32 = arith.constant 0 : i32
    return %arg0, %arg1 : i32, i32
  }
}

module attributes {stable_mosaic.version = 11 : i64} {
  func.func @_conv_stats_kernel(%arg0: i32, %arg1: i32, %arg2: i32, %arg3: memref<16x896xbf16, #tpu.memory_space<vmem>>, %arg4: memref<896x128xbf16, #tpu.memory_space<vmem>>, %arg5: memref<1x128xf32, #tpu.memory_space<vmem>>, %arg6: memref<16x128xbf16, #tpu.memory_space<vmem>>, %arg7: memref<8x128xf32, #tpu.memory_space<vmem>>, %arg8: memref<8x128xf32, #tpu.memory_space<vmem>>, %arg9: memref<16x128xf32, #tpu.memory_space<vmem>>) attributes {dimension_semantics = [#tpu.dimension_semantics<parallel>, #tpu.dimension_semantics<parallel>, #tpu.dimension_semantics<arbitrary>], iteration_bounds = array<i64: 1, 1, 1>, scalar_prefetch = 0 : i64, scratch_operands = 1 : i64, tpu.core_type = #tpu.core_type<tc>, window_params = [{transform_indices = @transform_0, window_bounds = array<i64: 16, 896>}, {transform_indices = @transform_1, window_bounds = array<i64: 896, 128>}, {transform_indices = @transform_2, window_bounds = array<i64: 1, 128>}, {transform_indices = @transform_3, window_bounds = array<i64: 16, 128>}, {transform_indices = @transform_4, window_bounds = array<i64: 8, 128>}, {transform_indices = @transform_5, window_bounds = array<i64: 8, 128>}]} {
    %c0_i32 = arith.constant 0 : i32
    %0 = arith.cmpi eq, %arg2, %c0_i32 : i32
    %1 = arith.extui %0 : i1 to i32
    %c0_i32_0 = arith.constant 0 : i32
    %2 = arith.cmpi ne, %1, %c0_i32_0 : i32
    scf.if %2 {
      %cst_10 = arith.constant 0.000000e+00 : f32
      %12 = vector.broadcast %cst_10 : f32 to vector<16x128xf32>
      %c0_11 = arith.constant 0 : index
      %c0_12 = arith.constant 0 : index
      %13 = vector.load %arg9[%c0_11, %c0_12] : memref<16x128xf32, #tpu.memory_space<vmem>>, vector<16x128xf32>
      tpu.vector_store %arg9[%c0_11, %c0_12], %12 {strides = array<i32>} : memref<16x128xf32, #tpu.memory_space<vmem>>, vector<16x128xf32>,
    } else {
    }
    %c0 = arith.constant 0 : index
    %c0_1 = arith.constant 0 : index
    %3 = vector.load %arg9[%c0, %c0_1] : memref<16x128xf32, #tpu.memory_space<vmem>>, vector<16x128xf32>
    %c0_2 = arith.constant 0 : index
    %c0_3 = arith.constant 0 : index
    %4 = vector.load %arg3[%c0_2, %c0_3] : memref<16x896xbf16, #tpu.memory_space<vmem>>, vector<16x896xbf16>
    %c0_4 = arith.constant 0 : index
    %c0_5 = arith.constant 0 : index
    %5 = vector.load %arg4[%c0_4, %c0_5] : memref<896x128xbf16, #tpu.memory_space<vmem>>, vector<896x128xbf16>
    %cst = arith.constant dense<0.000000e+00> : vector<16x128xf32>
    %6 = tpu.matmul %4, %5, %cst {dimension_numbers = #tpu.dot_dimension_numbers<[1], [0], [0], [1], [0, 0, 1, 1], [], []>} : vector<16x896xbf16>, vector<896x128xbf16>, vector<16x128xf32> -> vector<16x128xf32>
    %7 = arith.addf %3, %6 : vector<16x128xf32>
    %c0_6 = arith.constant 0 : index
    %c0_7 = arith.constant 0 : index
    %8 = vector.load %arg9[%c0_6, %c0_7] : memref<16x128xf32, #tpu.memory_space<vmem>>, vector<16x128xf32>
    tpu.vector_store %arg9[%c0_6, %c0_7], %7 {strides = array<i32>} : memref<16x128xf32, #tpu.memory_space<vmem>>, vector<16x128xf32>,
    %c0_i32_8 = arith.constant 0 : i32
    %9 = arith.cmpi eq, %arg2, %c0_i32_8 : i32
    %10 = arith.extui %9 : i1 to i32
    %c0_i32_9 = arith.constant 0 : i32
    %11 = arith.cmpi ne, %10, %c0_i32_9 : i32
    scf.if %11 {
      %c0_10 = arith.constant 0 : index
      %c0_11 = arith.constant 0 : index
      %12 = vector.load %arg9[%c0_10, %c0_11] : memref<16x128xf32, #tpu.memory_space<vmem>>, vector<16x128xf32>
      %c0_12 = arith.constant 0 : index
      %c0_13 = arith.constant 0 : index
      %13 = vector.load %arg5[%c0_12, %c0_13] : memref<1x128xf32, #tpu.memory_space<vmem>>, vector<1x128xf32>
      %14 = vector.broadcast %13 : vector<1x128xf32> to vector<16x128xf32>
      %15 = arith.addf %12, %14 : vector<16x128xf32>
      %16 = arith.truncf %15 : vector<16x128xf32> to vector<16x128xbf16>
      %c0_14 = arith.constant 0 : index
      %c0_15 = arith.constant 0 : index
      %17 = vector.load %arg6[%c0_14, %c0_15] : memref<16x128xbf16, #tpu.memory_space<vmem>>, vector<16x128xbf16>
      tpu.vector_store %arg6[%c0_14, %c0_15], %16 {strides = array<i32>} : memref<16x128xbf16, #tpu.memory_space<vmem>>, vector<16x128xbf16>,
      %cst_16 = arith.constant dense<0.000000e+00> : vector<128xf32>
      %18 = vector.multi_reduction <add>, %15, %cst_16 [0] : vector<16x128xf32> to vector<128xf32>
      %19 = vector.shape_cast %18 : vector<128xf32> to vector<1x128xf32>
      %20 = arith.mulf %15, %15 : vector<16x128xf32>
      %cst_17 = arith.constant dense<0.000000e+00> : vector<128xf32>
      %21 = vector.multi_reduction <add>, %20, %cst_17 [0] : vector<16x128xf32> to vector<128xf32>
      %22 = vector.shape_cast %21 : vector<128xf32> to vector<1x128xf32>
      %23 = vector.shape_cast %19 : vector<1x128xf32> to vector<1x128xf32>
      %24 = vector.broadcast %23 : vector<1x128xf32> to vector<8x128xf32>
      %c0_18 = arith.constant 0 : index
      %c0_19 = arith.constant 0 : index
      %25 = vector.load %arg7[%c0_18, %c0_19] : memref<8x128xf32, #tpu.memory_space<vmem>>, vector<8x128xf32>
      tpu.vector_store %arg7[%c0_18, %c0_19], %24 {strides = array<i32>} : memref<8x128xf32, #tpu.memory_space<vmem>>, vector<8x128xf32>,
      %26 = vector.shape_cast %22 : vector<1x128xf32> to vector<1x128xf32>
      %27 = vector.broadcast %26 : vector<1x128xf32> to vector<8x128xf32>
      %c0_20 = arith.constant 0 : index
      %c0_21 = arith.constant 0 : index
      %28 = vector.load %arg8[%c0_20, %c0_21] : memref<8x128xf32, #tpu.memory_space<vmem>>, vector<8x128xf32>
      tpu.vector_store %arg8[%c0_20, %c0_21], %27 {strides = array<i32>} : memref<8x128xf32, #tpu.memory_space<vmem>>, vector<8x128xf32>,
    } else {
    }
    return
  }
  func.func @transform_0(%arg0: i32, %arg1: i32, %arg2: i32) -> (i32, i32) {
    %c0_i32 = arith.constant 0 : i32
    return %arg0, %arg2 : i32, i32
  }
  func.func @transform_1(%arg0: i32, %arg1: i32, %arg2: i32) -> (i32, i32) {
    %c0_i32 = arith.constant 0 : i32
    return %arg2, %arg1 : i32, i32
  }
  func.func @transform_2(%arg0: i32, %arg1: i32, %arg2: i32) -> (i32, i32) {
    %c0_i32 = arith.constant 0 : i32
    %c0_i32_0 = arith.constant 0 : i32
    return %c0_i32, %arg1 : i32, i32
  }
  func.func @transform_3(%arg0: i32, %arg1: i32, %arg2: i32) -> (i32, i32) {
    %c0_i32 = arith.constant 0 : i32
    return %arg0, %arg1 : i32, i32
  }
  func.func @transform_4(%arg0: i32, %arg1: i32, %arg2: i32) -> (i32, i32) {
    %c0_i32 = arith.constant 0 : i32
    return %arg0, %arg1 : i32, i32
  }
  func.func @transform_5(%arg0: i32, %arg1: i32, %arg2: i32) -> (i32, i32) {
    %c0_i32 = arith.constant 0 : i32
    return %arg0, %arg1 : i32, i32
  }
}

module attributes {stable_mosaic.version = 11 : i64} {
  func.func @_head_kernel(%arg0: i32, %arg1: memref<3x512xbf16, #tpu.memory_space<vmem>>, %arg2: memref<1x512xf32, #tpu.memory_space<vmem>>, %arg3: memref<1x512xf32, #tpu.memory_space<vmem>>, %arg4: memref<512x128xbf16, #tpu.memory_space<vmem>>, %arg5: memref<1x128xf32, #tpu.memory_space<vmem>>, %arg6: memref<3x128xf32, #tpu.memory_space<vmem>>, %arg7: memref<3x128xf32, #tpu.memory_space<vmem>>) attributes {dimension_semantics = [#tpu.dimension_semantics<arbitrary>], iteration_bounds = array<i64: 1>, scalar_prefetch = 0 : i64, scratch_operands = 0 : i64, tpu.core_type = #tpu.core_type<tc>, window_params = [{transform_indices = @transform_0, window_bounds = array<i64: 3, 512>}, {transform_indices = @transform_1, window_bounds = array<i64: 1, 512>}, {transform_indices = @transform_2, window_bounds = array<i64: 1, 512>}, {transform_indices = @transform_3, window_bounds = array<i64: 512, 128>}, {pipeline_mode = #tpu.pipeline_mode<synchronous>, transform_indices = @transform_4, window_bounds = array<i64: 1, 128>}, {pipeline_mode = #tpu.pipeline_mode<synchronous>, transform_indices = @transform_5, window_bounds = array<i64: 3, 128>}, {pipeline_mode = #tpu.pipeline_mode<synchronous>, transform_indices = @transform_6, window_bounds = array<i64: 3, 128>}]} {
    %c0_i32 = arith.constant 0 : i32
    %0 = arith.cmpi eq, %arg0, %c0_i32 : i32
    %1 = arith.extui %0 : i1 to i32
    %c0_i32_0 = arith.constant 0 : i32
    %2 = arith.cmpi ne, %1, %c0_i32_0 : i32
    scf.if %2 {
      %c0_16 = arith.constant 0 : index
      %c0_17 = arith.constant 0 : index
      %25 = vector.load %arg5[%c0_16, %c0_17] : memref<1x128xf32, #tpu.memory_space<vmem>>, vector<1x128xf32>
      %26 = vector.shape_cast %25 : vector<1x128xf32> to vector<1x128xf32>
      %27 = vector.broadcast %26 : vector<1x128xf32> to vector<3x128xf32>
      %c0_18 = arith.constant 0 : index
      %c0_19 = arith.constant 0 : index
      %28 = vector.load %arg6[%c0_18, %c0_19] : memref<3x128xf32, #tpu.memory_space<vmem>>, vector<3x128xf32>
      tpu.vector_store %arg6[%c0_18, %c0_19], %27 {strides = array<i32>} : memref<3x128xf32, #tpu.memory_space<vmem>>, vector<3x128xf32>,
    } else {
    }
    %c0 = arith.constant 0 : index
    %c0_1 = arith.constant 0 : index
    %3 = vector.load %arg1[%c0, %c0_1] : memref<3x512xbf16, #tpu.memory_space<vmem>>, vector<3x512xbf16>
    %4 = arith.extf %3 : vector<3x512xbf16> to vector<3x512xf32>
    %c0_2 = arith.constant 0 : index
    %c0_3 = arith.constant 0 : index
    %5 = vector.load %arg2[%c0_2, %c0_3] : memref<1x512xf32, #tpu.memory_space<vmem>>, vector<1x512xf32>
    %6 = vector.broadcast %5 : vector<1x512xf32> to vector<3x512xf32>
    %7 = arith.mulf %4, %6 : vector<3x512xf32>
    %c0_4 = arith.constant 0 : index
    %c0_5 = arith.constant 0 : index
    %8 = vector.load %arg3[%c0_4, %c0_5] : memref<1x512xf32, #tpu.memory_space<vmem>>, vector<1x512xf32>
    %9 = vector.broadcast %8 : vector<1x512xf32> to vector<3x512xf32>
    %10 = arith.addf %7, %9 : vector<3x512xf32>
    %cst = arith.constant 0.000000e+00 : f32
    %11 = vector.broadcast %cst : f32 to vector<3x512xf32>
    %12 = arith.cmpf oge, %10, %11 : vector<3x512xf32>
    %cst_6 = arith.constant 0.00999999977 : f32
    %13 = vector.broadcast %cst_6 : f32 to vector<3x512xf32>
    %14 = arith.mulf %13, %10 : vector<3x512xf32>
    %15 = arith.select %12, %10, %14 : vector<3x512xi1>, vector<3x512xf32>
    %c0_7 = arith.constant 0 : index
    %c0_8 = arith.constant 0 : index
    %16 = vector.load %arg6[%c0_7, %c0_8] : memref<3x128xf32, #tpu.memory_space<vmem>>, vector<3x128xf32>
    %17 = arith.truncf %15 : vector<3x512xf32> to vector<3x512xbf16>
    %c0_9 = arith.constant 0 : index
    %c0_10 = arith.constant 0 : index
    %18 = vector.load %arg4[%c0_9, %c0_10] : memref<512x128xbf16, #tpu.memory_space<vmem>>, vector<512x128xbf16>
    %cst_11 = arith.constant dense<0.000000e+00> : vector<3x128xf32>
    %19 = tpu.matmul %17, %18, %cst_11 {dimension_numbers = #tpu.dot_dimension_numbers<[1], [0], [0], [1], [0, 0, 1, 1], [], []>} : vector<3x512xbf16>, vector<512x128xbf16>, vector<3x128xf32> -> vector<3x128xf32>
    %20 = arith.addf %16, %19 : vector<3x128xf32>
    %c0_12 = arith.constant 0 : index
    %c0_13 = arith.constant 0 : index
    %21 = vector.load %arg6[%c0_12, %c0_13] : memref<3x128xf32, #tpu.memory_space<vmem>>, vector<3x128xf32>
    tpu.vector_store %arg6[%c0_12, %c0_13], %20 {strides = array<i32>} : memref<3x128xf32, #tpu.memory_space<vmem>>, vector<3x128xf32>,
    %c0_i32_14 = arith.constant 0 : i32
    %22 = arith.cmpi eq, %arg0, %c0_i32_14 : i32
    %23 = arith.extui %22 : i1 to i32
    %c0_i32_15 = arith.constant 0 : i32
    %24 = arith.cmpi ne, %23, %c0_i32_15 : i32
    scf.if %24 {
      %c0_16 = arith.constant 0 : index
      %c0_17 = arith.constant 0 : index
      %25 = vector.load %arg6[%c0_16, %c0_17] : memref<3x128xf32, #tpu.memory_space<vmem>>, vector<3x128xf32>
      %cst_18 = arith.constant 5.000000e-01 : f32
      %26 = vector.broadcast %cst_18 : f32 to vector<3x128xf32>
      %27 = arith.mulf %26, %25 : vector<3x128xf32>
      %28 = math.tanh %27 : vector<3x128xf32>
      %cst_19 = arith.constant 1.000000e+00 : f32
      %29 = vector.broadcast %cst_19 : f32 to vector<3x128xf32>
      %30 = arith.addf %28, %29 : vector<3x128xf32>
      %cst_20 = arith.constant 5.000000e-01 : f32
      %31 = vector.broadcast %cst_20 : f32 to vector<3x128xf32>
      %32 = arith.mulf %31, %30 : vector<3x128xf32>
      %c0_21 = arith.constant 0 : index
      %c0_22 = arith.constant 0 : index
      %33 = vector.load %arg7[%c0_21, %c0_22] : memref<3x128xf32, #tpu.memory_space<vmem>>, vector<3x128xf32>
      tpu.vector_store %arg7[%c0_21, %c0_22], %32 {strides = array<i32>} : memref<3x128xf32, #tpu.memory_space<vmem>>, vector<3x128xf32>,
    } else {
    }
    return
  }
  func.func @transform_0(%arg0: i32) -> (i32, i32) {
    %c0_i32 = arith.constant 0 : i32
    %c0_i32_0 = arith.constant 0 : i32
    return %c0_i32, %arg0 : i32, i32
  }
  func.func @transform_1(%arg0: i32) -> (i32, i32) {
    %c0_i32 = arith.constant 0 : i32
    %c0_i32_0 = arith.constant 0 : i32
    return %c0_i32, %arg0 : i32, i32
  }
  func.func @transform_2(%arg0: i32) -> (i32, i32) {
    %c0_i32 = arith.constant 0 : i32
    %c0_i32_0 = arith.constant 0 : i32
    return %c0_i32, %arg0 : i32, i32
  }
  func.func @transform_3(%arg0: i32) -> (i32, i32) {
    %c0_i32 = arith.constant 0 : i32
    %c0_i32_0 = arith.constant 0 : i32
    return %arg0, %c0_i32 : i32, i32
  }
  func.func @transform_4(%arg0: i32) -> (i32, i32) {
    %c0_i32 = arith.constant 0 : i32
    %c0_i32_0 = arith.constant 0 : i32
    %c0_i32_1 = arith.constant 0 : i32
    return %c0_i32, %c0_i32_0 : i32, i32
  }
  func.func @transform_5(%arg0: i32) -> (i32, i32) {
    %c0_i32 = arith.constant 0 : i32
    %c0_i32_0 = arith.constant 0 : i32
    %c0_i32_1 = arith.constant 0 : i32
    return %c0_i32, %c0_i32_0 : i32, i32
  }
  func.func @transform_6(%arg0: i32) -> (i32, i32) {
    %c0_i32 = arith.constant 0 : i32
    %c0_i32_0 = arith.constant 0 : i32
    %c0_i32_1 = arith.constant 0 : i32
    return %c0_i32, %c0_i32_0 : i32, i32
  }
}

</mosaic_0001>

<bundles_post_ra>
// kernel: discriminator_forward.5
= control target key start
LH: loop header
LB: loop body
LE: loop exit
PB: predicated region body
PF: predicated region fallthrough
CT: control target
= control target key end

     0   :  { %s2268_s18 = smov 0   ;;  %s2270_s19 = smov 0   ;;  %s2816_s0 = inlined_call_operand.vmem [shape: bf16[1024,128], index: 0, kind: input, shape index: {}]   ;;  %s2817_s1 = inlined_call_operand.vmem [shape: bf16[128,128], index: 1, kind: input, shape index: {}]   ;;  %s2818_s2 = inlined_call_operand.vmem [shape: f32[1,128], index: 2, kind: input, shape index: {}]   ;;  %s2819_s3 = inlined_call_operand.vmem [shape: bf16[1024,128], index: 3, kind: output, shape index: {0}]   ;;  %s2820_s4 = inlined_call_operand.vmem [shape: f32[16,128], index: 4, kind: output, shape index: {1}]   ;;  %s2821_s5 = inlined_call_operand.vmem [shape: f32[16,128], index: 5, kind: output, shape index: {2}]  }
   0x1   :  { %s2272_s20 = smov 0  }
   0x2 LB: > { %s35_s21 = sadd.s32 1, %s2232_s19  ;;  %p1765_p0 = scmp.ge.s32.totalorder %s2236_s20, 1  ;;  %s2236_s20 = sphi %s2272_s20, %s16_s20   ;;  %s2232_s19 = sphi %s2270_s19, %s2823_s19   ;;  %s2228_s18 = sphi %s2268_s18, %s2822_s18  }
   0x3   : > { %p37_p1 = scmp.ge.s32.totalorder %s35_s21, 2  ;;  %p247_p2 = scmp.lt.s32.totalorder %s2236_s20, 3 }
   0x5   : > { %s2825_s21 = smov (%p37_p1, %s35_s21), 0  ;;  %p248_p3 = pnand %p1765_p0, %p247_p2 }
   0x6   : > { %s1766_s30 = sshll.u32 (!%p248_p3), %s2228_s18, 6  ;;  %p336_p5 = scmp.lt.s32.totalorder (!%p248_p3), %s2228_s18, 1 }
   0x7   : > { %251 = sbr.rel (%p248_p3) target bundleno = 405 (0x195), region = 32  ;;  %p307_p4 = scmp.lt.s32.totalorder (!%p248_p3), %s1766_s30, 127 }
   0xc   : > { %v1973_v0 = vld [vmem:[%s2817_s1 + $0x38] sm:$0xff]  ;;  %v1972_v1 = vld [vmem:[%s2817_s1 + $0x30] sm:$0xff]  ;;  %v1971_v2 = vld [vmem:[%s2817_s1 + $0x28] sm:$0xff]  ;;  %s2827_s30 = smov (!%p307_p4, %s1766_s30), 127  ;;  %s2829_s18 = smov (!%p336_p5, %s2228_s18), 1 }
   0xd   : > { %802 = vmatpush.bf16.msra.mxu0 %v1973_v0  ;;  %2165 = vmatpush.bf16.msra.mxu1 %v1973_v0  ;;  %v1970_v3 = vld [vmem:[%s2817_s1 + $0x20] sm:$0xff]  ;;  %v1969_v4 = vld [vmem:[%s2817_s1 + $0x18] sm:$0xff]  ;;  %v1968_v5 = vld [vmem:[%s2817_s1 + $0x10] sm:$0xff]  ;;  %s1767_s12 = sshll.u32 %s2827_s30, 2  ;;  %s1770_s27 = sshll.u32 %s2829_s18, 3 }
   0xe   : > { %2166 = vmatpush.bf16.msra.mxu2 %v1973_v0  ;;  %2167 = vmatpush.bf16.msra.mxu3 %v1973_v0  ;;  %v1967_v6 = vld [vmem:[%s2817_s1 + $0x8] sm:$0xff]  ;;  %v1966_v7 = vld [vmem:[%s2817_s1] sm:$0xff]  ;;  %s2321_s17 = scalar_lea.vmem %s2816_s0, %s1767_s12  ;;  %s2371_s26 = scalar_lea.vmem %s2819_s3, %s1767_s12 }
   0xf   : > { %v1934_v8 = vld [vmem:[%s2321_s17] sm:$0xff]  ;;  %v1935_v10 = vld [vmem:[%s2321_s17 + $0x8] sm:$0xff]  ;;  %v1936_v13 = vld [vmem:[%s2321_s17 + $0x10] sm:$0xff]  ;;  %s342_s30 = scalar_lea.vmem %s2820_s4, %s1770_s27  ;;  %s349_s8 = scalar_lea.vmem %s2821_s5, %s1770_s27 }
  0x10   : > { %v1942_v9 = vld [vmem:[%s2321_s17 + $0x40] sm:$0xff]  ;;  %v1943_v11 = vld [vmem:[%s2321_s17 + $0x48] sm:$0xff]  ;;  %v1944_v14 = vld [vmem:[%s2321_s17 + $0x50] sm:$0xff] }
  0x11   : > { %803 = vmatpush.bf16.msra.mxu0 %v1972_v1  ;;  %2168 = vmatpush.bf16.msra.mxu1 %v1972_v1  ;;  %v1950_v12 = vld [vmem:[%s2321_s17 + $0x80] sm:$0xff]  ;;  %v1951_v15 = vld [vmem:[%s2321_s17 + $0x88] sm:$0xff]  ;;  %v1937_v16 = vld [vmem:[%s2321_s17 + $0x18] sm:$0xff] }
  0x12   : > { %2169 = vmatpush.bf16.msra.mxu2 %v1972_v1  ;;  %2170 = vmatpush.bf16.msra.mxu3 %v1972_v1  ;;  %v1945_v17 = vld [vmem:[%s2321_s17 + $0x58] sm:$0xff]  ;;  %v1952_v18 = vld [vmem:[%s2321_s17 + $0x90] sm:$0xff]  ;;  %v1958_v19 = vld [vmem:[%s2321_s17 + $0xc0] sm:$0xff] }
  0x13   : > { %v1938_v20 = vld [vmem:[%s2321_s17 + $0x20] sm:$0xff]  ;;  %v1953_v22 = vld [vmem:[%s2321_s17 + $0x98] sm:$0xff]  ;;  %v1959_v23 = vld [vmem:[%s2321_s17 + $0xc8] sm:$0xff] }
  0x14   : > { %v1946_v21 = vld [vmem:[%s2321_s17 + $0x60] sm:$0xff]  ;;  %v1939_v24 = vld [vmem:[%s2321_s17 + $0x28] sm:$0xff]  ;;  %v1960_v27 = vld [vmem:[%s2321_s17 + $0xd0] sm:$0xff] }
  0x15   : > { %804 = vmatpush.bf16.msra.mxu0 %v1971_v2  ;;  %2171 = vmatpush.bf16.msra.mxu1 %v1971_v2  ;;  %v1947_v25 = vld [vmem:[%s2321_s17 + $0x68] sm:$0xff]  ;;  %v1954_v26 = vld [vmem:[%s2321_s17 + $0xa0] sm:$0xff]  ;;  %v1940_v28 = vld [vmem:[%s2321_s17 + $0x30] sm:$0xff] }
  0x16   : > { %2172 = vmatpush.bf16.msra.mxu2 %v1971_v2  ;;  %2173 = vmatpush.bf16.msra.mxu3 %v1971_v2  ;;  %v1948_v29 = vld [vmem:[%s2321_s17 + $0x70] sm:$0xff]  ;;  %v1955_v30 = vld [vmem:[%s2321_s17 + $0xa8] sm:$0xff]  ;;  %v1961_v31 = vld [vmem:[%s2321_s17 + $0xd8] sm:$0xff] }
  0x17   : > { %v1941_v32 = vld [vmem:[%s2321_s17 + $0x38] sm:$0xff]  ;;  %v1956_v34 = vld [vmem:[%s2321_s17 + $0xb0] sm:$0xff]  ;;  %v1962_v35 = vld [vmem:[%s2321_s17 + $0xe0] sm:$0xff] }
  0x18   : > { %v1949_v33 = vld [vmem:[%s2321_s17 + $0x78] sm:$0xff]  ;;  %v2354_v38 = vld [vmem:[%s2818_s2] ss:$0 sm:$0xff]  ;;  %v1963_v40 = vld [vmem:[%s2321_s17 + $0xe8] sm:$0xff] }
  0x19   : > { %805 = vmatpush.bf16.msra.mxu0 %v1970_v3  ;;  %2174 = vmatpush.bf16.msra.mxu1 %v1970_v3  ;;  %v1957_v39 = vld [vmem:[%s2321_s17 + $0xb8] sm:$0xff]  ;;  %v1964_v58 = vld [vmem:[%s2321_s17 + $0xf0] sm:$0xff] }
  0x1a   : > { %2175 = vmatpush.bf16.msra.mxu2 %v1970_v3  ;;  %2176 = vmatpush.bf16.msra.mxu3 %v1970_v3 }
  0x1d   : > { %806 = vmatpush.bf16.msra.mxu0 %v1969_v4  ;;  %2177 = vmatpush.bf16.msra.mxu1 %v1969_v4 }
  0x1e   : > { %2178 = vmatpush.bf16.msra.mxu2 %v1969_v4  ;;  %2179 = vmatpush.bf16.msra.mxu3 %v1969_v4 }
  0x21   : > { %807 = vmatpush.bf16.msra.mxu0 %v1968_v5  ;;  %2180 = vmatpush.bf16.msra.mxu1 %v1968_v5 }
  0x22   : > { %2181 = vmatpush.bf16.msra.mxu2 %v1968_v5  ;;  %2182 = vmatpush.bf16.msra.mxu3 %v1968_v5 }
  0x25   : > { %808 = vmatpush.bf16.msra.mxu0 %v1967_v6  ;;  %2183 = vmatpush.bf16.msra.mxu1 %v1967_v6 }
  0x26   : > { %2184 = vmatpush.bf16.msra.mxu2 %v1967_v6  ;;  %2185 = vmatpush.bf16.msra.mxu3 %v1967_v6 }
  0x29   : > { %809 = vmatpush.bf16.msra.mxu0 %v1966_v7  ;;  %2186 = vmatpush.bf16.msra.mxu1 %v1966_v7 }
  0x2a   : > { %2187 = vmatpush.bf16.msra.mxu2 %v1966_v7  ;;  %2188 = vmatpush.bf16.msra.mxu3 %v1966_v7 }
  0x2c   : > { %810 = vmatmul.bf16.vlgmr.msra.gmra.mxu0 %v1934_v8  ;;  %850 = vmatmul.bf16.vlgmr.msra.gmra.mxu1 %v1942_v9 }
  0x2d   : > { %890 = vmatmul.bf16.vlgmr.msra.gmra.mxu2 %v1950_v12  ;;  %930 = vmatmul.bf16.vlgmr.msra.gmra.mxu3 %v1958_v19  ;;  %v1965_v12 = vld [vmem:[%s2321_s17 + $0xf8] sm:$0xff] }
  0x3c   : > { %815 = vmatmul.bf16.gmra.mxu0 %v1935_v10  ;;  %855 = vmatmul.bf16.gmra.mxu1 %v1943_v11 }
  0x3d   : > { %895 = vmatmul.bf16.gmra.mxu2 %v1951_v15  ;;  %935 = vmatmul.bf16.gmra.mxu3 %v1959_v23 }
  0x4c   : > { %820 = vmatmul.bf16.gmra.mxu0 %v1936_v13  ;;  %860 = vmatmul.bf16.gmra.mxu1 %v1944_v14 }
  0x4d   : > { %900 = vmatmul.bf16.gmra.mxu2 %v1952_v18  ;;  %940 = vmatmul.bf16.gmra.mxu3 %v1960_v27 }
  0x5c   : > { %825 = vmatmul.bf16.gmra.mxu0 %v1937_v16  ;;  %865 = vmatmul.bf16.gmra.mxu1 %v1945_v17 }
  0x5d   : > { %905 = vmatmul.bf16.gmra.mxu2 %v1953_v22  ;;  %945 = vmatmul.bf16.gmra.mxu3 %v1961_v31 }
  0x6c   : > { %830 = vmatmul.bf16.gmra.mxu0 %v1938_v20  ;;  %870 = vmatmul.bf16.gmra.mxu1 %v1946_v21 }
  0x6d   : > { %910 = vmatmul.bf16.gmra.mxu2 %v1954_v26  ;;  %950 = vmatmul.bf16.gmra.mxu3 %v1962_v35 }
  0x7c   : > { %835 = vmatmul.bf16.gmra.mxu0 %v1939_v24  ;;  %875 = vmatmul.bf16.gmra.mxu1 %v1947_v25 }
  0x7d   : > { %915 = vmatmul.bf16.gmra.mxu2 %v1955_v30  ;;  %955 = vmatmul.bf16.gmra.mxu3 %v1963_v40 }
  0x8c   : > { %840 = vmatmul.bf16.gmra.mxu0 %v1940_v28  ;;  %880 = vmatmul.bf16.gmra.mxu1 %v1948_v29 }
  0x8d   : > { %920 = vmatmul.bf16.gmra.mxu2 %v1956_v34  ;;  %960 = vmatmul.bf16.gmra.mxu3 %v1964_v58 }
  0x9c   : > { %845 = vmatmul.bf16.gmra.mxu0 %v1941_v32  ;;  %885 = vmatmul.bf16.gmra.mxu1 %v1949_v33 }
  0x9d   : > { %925 = vmatmul.bf16.gmra.mxu2 %v1957_v39  ;;  %965 = vmatmul.bf16.gmra.mxu3 %v1965_v12 }
  0xa9   : > { %v811_v36 = vpop.f32.mrf.mxu0  ;;  %v851_v37 = vpop.f32.mrf.mxu1 }
  0xaa   : > { %v1170_v41 = vadd.f32 %v2354_v38, %v811_v36  ;;  %v2360_v42 = vadd.f32 %v2354_v38, %v851_v37 }
  0xac   : > { %v1431_v47 = vmul.f32 %v1170_v41, %v1170_v41 }
  0xb0   : > { %v891_v1 = vpop.f32.mrf.mxu2  ;;  %v931_v36 = vpop.f32.mrf.mxu3 }
  0xb1   : > { %v813_v43 = vpop.f32.mrf.mxu0  ;;  %v853_v44 = vpop.f32.mrf.mxu1  ;;  %v2395_v9 = vadd.f32 %v2354_v38, %v891_v1 }
  0xb2   : > { %v1171_v45 = vadd.f32 %v2354_v38, %v813_v43  ;;  %v2364_v46 = vadd.f32 %v2354_v38, %v853_v44  ;;  %v2453_v44 = vadd.f32 %v2354_v38, %v931_v36 }
  0xb4   : > { %v1977_v48 = vpack.c.bf16 %v1171_v45, %v1170_v41  ;;  %v1362_v49 = vadd.f32 %v1171_v45, %v1170_v41  ;;  %v1432_v50 = vmul.f32 %v1171_v45, %v1171_v45  ;;  %v2017_v51 = vpack.c.bf16 %v2364_v46, %v2360_v42 }
  0xb6   : > { %1978 = vst [vmem:[%s2371_s26] sm:$0xff] %v1977_v48   ;;  %v1495_v52 = vadd.f32 %v1432_v50, %v1431_v47 }
  0xb7   : > { %2141 = vst [vmem:[%s2371_s26 + $0x40] sm:$0xff] %v2017_v51  }
  0xb8   : > { %v893_v10 = vpop.f32.mrf.mxu2  ;;  %v933_v47 = vpop.f32.mrf.mxu3 }
  0xb9   : > { %v816_v53 = vpop.f32.mrf.mxu0  ;;  %v856_v54 = vpop.f32.mrf.mxu1  ;;  %v2398_v11 = vadd.f32 %v2354_v38, %v893_v10 }
  0xba   : > { %v1172_v55 = vadd.f32 %v2354_v38, %v816_v53  ;;  %v2380_v60 = vadd.f32 %v2354_v38, %v856_v54 }
  0xbb   : > { %v2057_v13 = vpack.c.bf16 %v2398_v11, %v2395_v9 }
  0xbc   : > { %v1363_v56 = vadd.f32 %v1362_v49, %v1172_v55  ;;  %v1433_v57 = vmul.f32 %v1172_v55, %v1172_v55  ;;  %v2459_v49 = vadd.f32 %v2354_v38, %v933_v47 }
  0xbd   : > { %2149 = vst [vmem:[%s2371_s26 + $0x80] sm:$0xff] %v2057_v13  }
  0xbe   : > { %v1496_v59 = vadd.f32 %v1495_v52, %v1433_v57  ;;  %v2097_v51 = vpack.c.bf16 %v2459_v49, %v2453_v44 }
  0xc0   : > { %v896_v20 = vpop.f32.mrf.mxu2  ;;  %2157 = vst [vmem:[%s2371_s26 + $0xc0] sm:$0xff] %v2097_v51  }
  0xc1   : > { %v818_v61 = vpop.f32.mrf.mxu0  ;;  %v858_v62 = vpop.f32.mrf.mxu1  ;;  %v2423_v25 = vadd.f32 %v2354_v38, %v896_v20 }
  0xc2   : > { %v1173_v63 = vadd.f32 %v2354_v38, %v818_v61  ;;  %v2384_v0 = vadd.f32 %v2354_v38, %v858_v62 }
  0xc4   : > { %v1982_v2 = vpack.c.bf16 %v1173_v63, %v1172_v55  ;;  %v2386_v3 = vadd.f32 %v1363_v56, %v1173_v63  ;;  %v1434_v4 = vmul.f32 %v1173_v63, %v1173_v63  ;;  %v2022_v5 = vpack.c.bf16 %v2384_v0, %v2380_v60 }
  0xc6   : > { %2134 = vst [vmem:[%s2371_s26 + $0x8] sm:$0xff] %v1982_v2   ;;  %v2391_v6 = vadd.f32 %v1496_v59, %v1434_v4  ;;  %v936_v59 = vpop.f32.mrf.mxu3 }
  0xc7   : > { %2142 = vst [vmem:[%s2371_s26 + $0x48] sm:$0xff] %v2022_v5   ;;  %v2489_v4 = vadd.f32 %v2354_v38, %v936_v59 }
  0xc8   : > { %v898_v26 = vpop.f32.mrf.mxu2 }
  0xc9   : > { %v821_v7 = vpop.f32.mrf.mxu0  ;;  %v861_v8 = vpop.f32.mrf.mxu1  ;;  %v2426_v27 = vadd.f32 %v2354_v38, %v898_v26 }
  0xca   : > { %v2405_v14 = vadd.f32 %v2354_v38, %v861_v8  ;;  %v2408_v17 = vadd.f32 %v2354_v38, %v821_v7 }
  0xcb   : > { %v2062_v28 = vpack.c.bf16 %v2426_v27, %v2423_v25 }
  0xcc   : > { %v1365_v51 = vadd.f32 %v2386_v3, %v2408_v17 }
  0xcd   : > { %2150 = vst [vmem:[%s2371_s26 + $0x88] sm:$0xff] %v2062_v28  }
  0xce   : > { %v938_v7 = vpop.f32.mrf.mxu3 }
  0xcf   : > { %v2495_v10 = vadd.f32 %v2354_v38, %v938_v7 }
  0xd0   : > { %v901_v35 = vpop.f32.mrf.mxu2 }
  0xd1   : > { %v823_v15 = vpop.f32.mrf.mxu0  ;;  %v863_v16 = vpop.f32.mrf.mxu1  ;;  %v2450_v43 = vadd.f32 %v2354_v38, %v901_v35  ;;  %v2102_v13 = vpack.c.bf16 %v2495_v10, %v2489_v4 }
  0xd2   : > { %v2411_v18 = vadd.f32 %v2354_v38, %v823_v15  ;;  %v2414_v19 = vadd.f32 %v2354_v38, %v863_v16 }
  0xd3   : > { %2158 = vst [vmem:[%s2371_s26 + $0xc8] sm:$0xff] %v2102_v13  }
  0xd4   : > { %v1987_v21 = vpack.c.bf16 %v2411_v18, %v2408_v17  ;;  %v2027_v22 = vpack.c.bf16 %v2414_v19, %v2405_v14 }
  0xd6   : > { %2135 = vst [vmem:[%s2371_s26 + $0x10] sm:$0xff] %v1987_v21   ;;  %v941_v26 = vpop.f32.mrf.mxu3 }
  0xd7   : > { %2143 = vst [vmem:[%s2371_s26 + $0x50] sm:$0xff] %v2027_v22  }
  0xd8   : > { %v903_v45 = vpop.f32.mrf.mxu2 }
  0xd9   : > { %v826_v23 = vpop.f32.mrf.mxu0  ;;  %v866_v24 = vpop.f32.mrf.mxu1  ;;  %v2456_v48 = vadd.f32 %v2354_v38, %v903_v45  ;;  %v1436_v45 = vmul.f32 %v2411_v18, %v2411_v18 }
  0xda   : > { %v2432_v29 = vadd.f32 %v2354_v38, %v866_v24  ;;  %v2435_v32 = vadd.f32 %v2354_v38, %v826_v23 }
  0xdb   : > { %v2067_v50 = vpack.c.bf16 %v2456_v48, %v2450_v43 }
  0xdd   : > { %2151 = vst [vmem:[%s2371_s26 + $0x90] sm:$0xff] %v2067_v50  }
  0xe0   : > { %v906_v58 = vpop.f32.mrf.mxu2 }
  0xe1   : > { %v828_v30 = vpop.f32.mrf.mxu0  ;;  %v868_v31 = vpop.f32.mrf.mxu1  ;;  %v2486_v2 = vadd.f32 %v2354_v38, %v906_v58 }
  0xe2   : > { %v2438_v33 = vadd.f32 %v2354_v38, %v828_v30  ;;  %v2441_v34 = vadd.f32 %v2354_v38, %v868_v31  ;;  %v1435_v31 = vmul.f32 %v2408_v17, %v2408_v17 }
  0xe4   : > { %v1992_v37 = vpack.c.bf16 %v2438_v33, %v2435_v32  ;;  %v2032_v39 = vpack.c.bf16 %v2441_v34, %v2432_v29 }
  0xe6   : > { %2136 = vst [vmem:[%s2371_s26 + $0x18] sm:$0xff] %v1992_v37  }
  0xe7   : > { %2144 = vst [vmem:[%s2371_s26 + $0x58] sm:$0xff] %v2032_v39   ;;  %v2524_v39 = vadd.f32 %v2354_v38, %v941_v26 }
  0xe8   : > { %v908_v5 = vpop.f32.mrf.mxu2 }
  0xe9   : > { %v831_v40 = vpop.f32.mrf.mxu0  ;;  %v871_v41 = vpop.f32.mrf.mxu1  ;;  %v2492_v8 = vadd.f32 %v2354_v38, %v908_v5 }
  0xea   : > { %v2467_v52 = vadd.f32 %v2354_v38, %v871_v41  ;;  %v2471_v55 = vadd.f32 %v2354_v38, %v831_v40  ;;  %v943_v41 = vpop.f32.mrf.mxu3 }
  0xeb   : > { %v2072_v12 = vpack.c.bf16 %v2492_v8, %v2486_v2  ;;  %v2532_v50 = vadd.f32 %v2354_v38, %v943_v41 }
  0xec   : > { %v1439_v7 = vmul.f32 %v2471_v55, %v2471_v55 }
  0xed   : > { %2152 = vst [vmem:[%s2371_s26 + $0x98] sm:$0xff] %v2072_v12   ;;  %v2107_v59 = vpack.c.bf16 %v2532_v50, %v2524_v39 }
  0xef   : > { %2159 = vst [vmem:[%s2371_s26 + $0xd0] sm:$0xff] %v2107_v59  }
  0xf0   : > { %v911_v24 = vpop.f32.mrf.mxu2 }
  0xf1   : > { %v833_v53 = vpop.f32.mrf.mxu0  ;;  %v873_v54 = vpop.f32.mrf.mxu1  ;;  %v2521_v37 = vadd.f32 %v2354_v38, %v911_v24 }
  0xf2   : > { %v2474_v56 = vadd.f32 %v2354_v38, %v833_v53  ;;  %v2477_v57 = vadd.f32 %v2354_v38, %v873_v54  ;;  %v1498_v53 = vadd.f32 %v2391_v6, %v1435_v31  ;;  %v1437_v54 = vmul.f32 %v2435_v32, %v2435_v32 }
  0xf4   : > { %v1997_v61 = vpack.c.bf16 %v2474_v56, %v2471_v55  ;;  %v2037_v62 = vpack.c.bf16 %v2477_v57, %v2467_v52  ;;  %v1440_v26 = vmul.f32 %v2474_v56, %v2474_v56 }
  0xf6   : > { %2137 = vst [vmem:[%s2371_s26 + $0x20] sm:$0xff] %v1997_v61   ;;  %v1366_v61 = vadd.f32 %v1365_v51, %v2411_v18 }
  0xf7   : > { %2145 = vst [vmem:[%s2371_s26 + $0x60] sm:$0xff] %v2037_v62   ;;  %v1499_v62 = vadd.f32 %v1498_v53, %v1436_v45 }
  0xf8   : > { %v913_v40 = vpop.f32.mrf.mxu2  ;;  %v1367_v6 = vadd.f32 %v1366_v61, %v2435_v32 }
  0xf9   : > { %v836_v63 = vpop.f32.mrf.mxu0  ;;  %v876_v1 = vpop.f32.mrf.mxu1  ;;  %v2529_v47 = vadd.f32 %v2354_v38, %v913_v40  ;;  %v1500_v17 = vadd.f32 %v1499_v62, %v1437_v54 }
  0xfa   : > { %v2503_v15 = vadd.f32 %v2354_v38, %v876_v1  ;;  %v1180_v21 = vadd.f32 %v2354_v38, %v836_v63  ;;  %v1438_v63 = vmul.f32 %v2438_v33, %v2438_v33  ;;  %v1368_v24 = vadd.f32 %v1367_v6, %v2438_v33 }
  0xfb   : > { %v2077_v58 = vpack.c.bf16 %v2529_v47, %v2521_v37 }
  0xfc   : > { %v1501_v32 = vadd.f32 %v1500_v17, %v1438_v63  ;;  %v1369_v31 = vadd.f32 %v1368_v24, %v2471_v55 }
  0xfd   : > { %2153 = vst [vmem:[%s2371_s26 + $0xa0] sm:$0xff] %v2077_v58  }
  0xfe   : > { %v1370_v40 = vadd.f32 %v1369_v31, %v2474_v56 }
 0x100   : > { %v1371_v53 = vadd.f32 %v1370_v40, %v1180_v21 }
 0x101   : > { %v838_v16 = vpop.f32.mrf.mxu0  ;;  %v878_v20 = vpop.f32.mrf.mxu1 }
 0x102   : > { %v2508_v22 = vadd.f32 %v2354_v38, %v838_v16  ;;  %v2511_v23 = vadd.f32 %v2354_v38, %v878_v20  ;;  %v916_v16 = vpop.f32.mrf.mxu2  ;;  %v946_v20 = vpop.f32.mrf.mxu3 }
 0x103   : > { %v2571_v58 = vadd.f32 %v2354_v38, %v916_v16  ;;  %v2574_v55 = vadd.f32 %v2354_v38, %v946_v20 }
 0x104   : > { %v2002_v28 = vpack.c.bf16 %v2508_v22, %v1180_v21  ;;  %v2042_v30 = vpack.c.bf16 %v2511_v23, %v2503_v15  ;;  %v1442_v33 = vmul.f32 %v2508_v22, %v2508_v22 }
 0x106   : > { %2138 = vst [vmem:[%s2371_s26 + $0x28] sm:$0xff] %v2002_v28  }
 0x107   : > { %2146 = vst [vmem:[%s2371_s26 + $0x68] sm:$0xff] %v2042_v30  }
 0x109   : > { %v841_v35 = vpop.f32.mrf.mxu0  ;;  %v881_v36 = vpop.f32.mrf.mxu1 }
 0x10a   : > { %v2548_v3 = vadd.f32 %v2354_v38, %v881_v36  ;;  %v1182_v18 = vadd.f32 %v2354_v38, %v841_v35  ;;  %v1502_v35 = vadd.f32 %v1501_v32, %v1439_v7  ;;  %v1441_v36 = vmul.f32 %v1180_v21, %v1180_v21  ;;  %v918_v59 = vpop.f32.mrf.mxu2  ;;  %v948_v61 = vpop.f32.mrf.mxu3 }
 0x10b   : > { %v2578_v63 = vadd.f32 %v2354_v38, %v918_v59  ;;  %v2581_v6 = vadd.f32 %v2354_v38, %v948_v61  ;;  %v1372_v21 = vadd.f32 %v1371_v53, %v2508_v22  ;;  %v1447_v53 = vmul.f32 %v2360_v42, %v2360_v42 }
 0x10c   : > { %v1503_v41 = vadd.f32 %v1502_v35, %v1440_v26  ;;  %v1443_v62 = vmul.f32 %v1182_v18, %v1182_v18  ;;  %v1448_v61 = vmul.f32 %v2364_v46, %v2364_v46 }
 0x10d   : > { %v2112_v7 = vpack.c.bf16 %v2581_v6, %v2574_v55  ;;  %v1373_v16 = vadd.f32 %v1372_v21, %v1182_v18 }
 0x10e   : > { %v1504_v54 = vadd.f32 %v1503_v41, %v1441_v36 }
 0x10f   : > { %2160 = vst [vmem:[%s2371_s26 + $0xd8] sm:$0xff] %v2112_v7  }
 0x110   : > { %v1505_v17 = vadd.f32 %v1504_v54, %v1442_v33 }
 0x111   : > { %v843_v1 = vpop.f32.mrf.mxu0  ;;  %v883_v5 = vpop.f32.mrf.mxu1 }
 0x112   : > { %v1183_v12 = vadd.f32 %v2354_v38, %v843_v1  ;;  %v2557_v13 = vadd.f32 %v2354_v38, %v883_v5  ;;  %v2082_v5 = vpack.c.bf16 %v2578_v63, %v2571_v58  ;;  %v1506_v20 = vadd.f32 %v1505_v17, %v1443_v62  ;;  %v951_v40 = vpop.f32.mrf.mxu3 }
 0x114   : > { %v2007_v28 = vpack.c.bf16 %v1183_v12, %v1182_v18  ;;  %v2047_v30 = vpack.c.bf16 %v2557_v13, %v2548_v3  ;;  %v1444_v1 = vmul.f32 %v1183_v12, %v1183_v12  ;;  %2154 = vst [vmem:[%s2371_s26 + $0xa8] sm:$0xff] %v2082_v5   ;;  %v1374_v32 = vadd.f32 %v1373_v16, %v1183_v12  ;;  %v921_v18 = vpop.f32.mrf.mxu2 }
 0x115   : > { %v2611_v5 = vadd.f32 %v2354_v38, %v921_v18  ;;  %v1452_v18 = vmul.f32 %v2414_v19, %v2414_v19 }
 0x116   : > { %2139 = vst [vmem:[%s2371_s26 + $0x30] sm:$0xff] %v2007_v28   ;;  %v1507_v28 = vadd.f32 %v1506_v20, %v1444_v1 }
 0x117   : > { %2147 = vst [vmem:[%s2371_s26 + $0x70] sm:$0xff] %v2047_v30  }
 0x119   : > { %v846_v45 = vpop.f32.mrf.mxu0  ;;  %v886_v51 = vpop.f32.mrf.mxu1 }
 0x11a   : > { %v1184_v56 = vadd.f32 %v2354_v38, %v846_v45  ;;  %v2590_v26 = vadd.f32 %v2354_v38, %v886_v51  ;;  %v953_v16 = vpop.f32.mrf.mxu3 }
 0x11c   : > { %v1445_v24 = vmul.f32 %v1184_v56, %v1184_v56  ;;  %v1375_v31 = vadd.f32 %v1374_v32, %v1184_v56  ;;  %v923_v7 = vpop.f32.mrf.mxu2 }
 0x11d   : > { %v2617_v20 = vadd.f32 %v2354_v38, %v923_v7 }
 0x11e   : > { %v1508_v41 = vadd.f32 %v1507_v28, %v1445_v24 }
 0x11f   : > { %v2087_v28 = vpack.c.bf16 %v2617_v20, %v2611_v5 }
 0x121   : > { %v848_v22 = vpop.f32.mrf.mxu0  ;;  %v888_v30 = vpop.f32.mrf.mxu1  ;;  %2155 = vst [vmem:[%s2371_s26 + $0xb0] sm:$0xff] %v2087_v28  }
 0x122   : > { %v1185_v35 = vadd.f32 %v2354_v38, %v848_v22  ;;  %v2595_v36 = vadd.f32 %v2354_v38, %v888_v30  ;;  %v1451_v30 = vmul.f32 %v2405_v14, %v2405_v14 }
 0x124   : > { %v2012_v33 = vpack.c.bf16 %v1185_v35, %v1184_v56  ;;  %v1376_v12 = vadd.f32 %v1375_v31, %v1185_v35  ;;  %v1446_v45 = vmul.f32 %v1185_v35, %v1185_v35  ;;  %v2052_v51 = vpack.c.bf16 %v2595_v36, %v2590_v26 }
 0x125   : > { %v1449_v56 = vmul.f32 %v2380_v60, %v2380_v60 }
 0x126   : > { %2140 = vst [vmem:[%s2371_s26 + $0x38] sm:$0xff] %v2012_v33   ;;  %v1377_v54 = vadd.f32 %v1376_v12, %v2360_v42  ;;  %v1509_v59 = vadd.f32 %v1508_v41, %v1446_v45  ;;  %v2614_v42 = vadd.f32 %v2354_v38, %v951_v40  ;;  %v1453_v41 = vmul.f32 %v2432_v29, %v2432_v29  ;;  %v926_v45 = vpop.f32.mrf.mxu2 }
 0x127   : > { %2148 = vst [vmem:[%s2371_s26 + $0x78] sm:$0xff] %v2052_v51   ;;  %v956_v51 = vpop.f32.mrf.mxu3 }
 0x128   : > { %v1378_v62 = vadd.f32 %v1377_v54, %v2364_v46  ;;  %v1510_v21 = vadd.f32 %v1509_v59, %v1447_v53  ;;  %v2620_v46 = vadd.f32 %v2354_v38, %v953_v16  ;;  %v1455_v59 = vmul.f32 %v2467_v52, %v2467_v52 }
 0x129   : > { %v2656_v7 = vadd.f32 %v2354_v38, %v956_v51 }
 0x12a   : > { %v1379_v17 = vadd.f32 %v1378_v62, %v2380_v60  ;;  %v1511_v1 = vadd.f32 %v1510_v21, %v1448_v61  ;;  %v1450_v60 = vmul.f32 %v2384_v0, %v2384_v0  ;;  %v2117_v22 = vpack.c.bf16 %v2620_v46, %v2614_v42 }
 0x12b   : > { %v1456_v62 = vmul.f32 %v2477_v57, %v2477_v57 }
 0x12c   : > { %v1380_v24 = vadd.f32 %v1379_v17, %v2384_v0  ;;  %v1512_v32 = vadd.f32 %v1511_v1, %v1449_v56  ;;  %2161 = vst [vmem:[%s2371_s26 + $0xe0] sm:$0xff] %v2117_v22   ;;  %v1457_v56 = vmul.f32 %v2503_v15, %v2503_v15  ;;  %v2653_v1 = vadd.f32 %v2354_v38, %v926_v45 }
 0x12e   : > { %v1381_v31 = vadd.f32 %v1380_v24, %v2405_v14  ;;  %v1513_v35 = vadd.f32 %v1512_v32, %v1450_v60  ;;  %v1454_v14 = vmul.f32 %v2441_v34, %v2441_v34 }
 0x12f   : > { %v958_v16 = vpop.f32.mrf.mxu3 }
 0x130   : > { %v1382_v40 = vadd.f32 %v1381_v31, %v2414_v19  ;;  %v1514_v0 = vadd.f32 %v1513_v35, %v1451_v30  ;;  %v1459_v31 = vmul.f32 %v2548_v3, %v2548_v3 }
 0x132   : > { %v1515_v33 = vadd.f32 %v1514_v0, %v1452_v18  ;;  %v1383_v12 = vadd.f32 %v1382_v40, %v2432_v29 }
 0x134   : > { %v1384_v53 = vadd.f32 %v1383_v12, %v2441_v34  ;;  %v1516_v54 = vadd.f32 %v1515_v33, %v1453_v41  ;;  %v1461_v33 = vmul.f32 %v2590_v26, %v2590_v26 }
 0x136   : > { %v1385_v19 = vadd.f32 %v1384_v53, %v2467_v52  ;;  %v1517_v61 = vadd.f32 %v1516_v54, %v1454_v14  ;;  %v928_v52 = vpop.f32.mrf.mxu2  ;;  %v1463_v14 = vmul.f32 %v2395_v9, %v2395_v9  ;;  %v1464_v54 = vmul.f32 %v2398_v11, %v2398_v11 }
 0x137   : > { %v2659_v60 = vadd.f32 %v2354_v38, %v928_v52  ;;  %v961_v12 = vpop.f32.mrf.mxu3 }
 0x138   : > { %v1386_v21 = vadd.f32 %v1385_v19, %v2477_v57  ;;  %v1518_v29 = vadd.f32 %v1517_v61, %v1455_v59  ;;  %v2662_v57 = vadd.f32 %v2354_v38, %v958_v16  ;;  %v1465_v19 = vmul.f32 %v2423_v25, %v2423_v25 }
 0x139   : > { %v2092_v28 = vpack.c.bf16 %v2659_v60, %v2653_v1  ;;  %v1468_v16 = vmul.f32 %v2456_v48, %v2456_v48 }
 0x13a   : > { %v1387_v17 = vadd.f32 %v1386_v21, %v2503_v15  ;;  %v1519_v34 = vadd.f32 %v1518_v29, %v1456_v62  ;;  %v1458_v15 = vmul.f32 %v2511_v23, %v2511_v23  ;;  %v2122_v22 = vpack.c.bf16 %v2662_v57, %v2656_v7 }
 0x13b   : > { %2156 = vst [vmem:[%s2371_s26 + $0xb8] sm:$0xff] %v2092_v28   ;;  %v1466_v29 = vmul.f32 %v2426_v27, %v2426_v27 }
 0x13c   : > { %v1388_v24 = vadd.f32 %v1387_v17, %v2511_v23  ;;  %v1520_v32 = vadd.f32 %v1519_v34, %v1457_v56  ;;  %v1460_v23 = vmul.f32 %v2557_v13, %v2557_v13  ;;  %2162 = vst [vmem:[%s2371_s26 + $0xe8] sm:$0xff] %v2122_v22  }
 0x13e   : > { %v1389_v30 = vadd.f32 %v1388_v24, %v2548_v3  ;;  %v1521_v35 = vadd.f32 %v1520_v32, %v1458_v15  ;;  %v1462_v3 = vmul.f32 %v2595_v36, %v2595_v36 }
 0x13f   : > { %v963_v21 = vpop.f32.mrf.mxu3 }
 0x140   : > { %v1522_v18 = vadd.f32 %v1521_v35, %v1459_v31  ;;  %v1390_v40 = vadd.f32 %v1389_v30, %v2557_v13  ;;  %v1470_v30 = vmul.f32 %v2492_v8, %v2492_v8  ;;  %v1471_v35 = vmul.f32 %v2521_v37, %v2521_v37 }
 0x142   : > { %v1523_v0 = vadd.f32 %v1522_v18, %v1460_v23  ;;  %v1391_v41 = vadd.f32 %v1390_v40, %v2590_v26 }
 0x144   : > { %v1524_v45 = vadd.f32 %v1523_v0, %v1461_v33  ;;  %v1392_v51 = vadd.f32 %v1391_v41, %v2595_v36  ;;  %v2695_v36 = vadd.f32 %v2354_v38, %v961_v12  ;;  %v1473_v0 = vmul.f32 %v2571_v58, %v2571_v58 }
 0x146   : > { %v1393_v53 = vadd.f32 %v1392_v51, %v2395_v9  ;;  %v1525_v13 = vadd.f32 %v1524_v45, %v1462_v3  ;;  %v2698_v9 = vadd.f32 %v2354_v38, %v963_v21  ;;  %v1474_v51 = vmul.f32 %v2578_v63, %v2578_v63 }
 0x147   : > { %v966_v22 = vpop.f32.mrf.mxu3 }
 0x148   : > { %v1394_v59 = vadd.f32 %v1393_v53, %v2398_v11  ;;  %v1526_v26 = vadd.f32 %v1525_v13, %v1463_v14  ;;  %v2127_v17 = vpack.c.bf16 %v2698_v9, %v2695_v36  ;;  %v2728_v33 = vadd.f32 %v2354_v38, %v966_v22 }
 0x149   : > { %v1475_v53 = vmul.f32 %v2611_v5, %v2611_v5 }
 0x14a   : > { %v1395_v61 = vadd.f32 %v1394_v59, %v2423_v25  ;;  %v1527_v62 = vadd.f32 %v1526_v26, %v1464_v54  ;;  %v1467_v25 = vmul.f32 %v2450_v43, %v2450_v43  ;;  %2163 = vst [vmem:[%s2371_s26 + $0xf0] sm:$0xff] %v2127_v17   ;;  %v1476_v54 = vmul.f32 %v2617_v20, %v2617_v20 }
 0x14b   : > { %v1477_v26 = vmul.f32 %v2653_v1, %v2653_v1 }
 0x14c   : > { %v1396_v56 = vadd.f32 %v1395_v61, %v2426_v27  ;;  %v1528_v11 = vadd.f32 %v1527_v62, %v1465_v19  ;;  %v1469_v27 = vmul.f32 %v2486_v2, %v2486_v2  ;;  %v1478_v62 = vmul.f32 %v2659_v60, %v2659_v60 }
 0x14e   : > { %v1397_v34 = vadd.f32 %v1396_v56, %v2450_v43  ;;  %v1529_v52 = vadd.f32 %v1528_v11, %v1466_v29 }
 0x14f   : > { %v968_v12 = vpop.f32.mrf.mxu3 }
 0x150   : > { %v1530_v15 = vadd.f32 %v1529_v52, %v1467_v25  ;;  %v1398_v24 = vadd.f32 %v1397_v34, %v2456_v48  ;;  %v1472_v48 = vmul.f32 %v2529_v47, %v2529_v47 }
 0x152   : > { %v1399_v32 = vadd.f32 %v1398_v24, %v2486_v2  ;;  %v1531_v28 = vadd.f32 %v1530_v15, %v1468_v16 }
 0x154   : > { %v1400_v43 = vadd.f32 %v1399_v32, %v2492_v8  ;;  %v1532_v31 = vadd.f32 %v1531_v28, %v1469_v27 }
 0x156   : > { %v1401_v18 = vadd.f32 %v1400_v43, %v2521_v37  ;;  %v1533_v40 = vadd.f32 %v1532_v31, %v1470_v30  ;;  %v2731_v37 = vadd.f32 %v2354_v38, %v968_v12 }
 0x158   : > { %v1402_v2 = vadd.f32 %v1401_v18, %v2529_v47  ;;  %v1534_v23 = vadd.f32 %v1533_v40, %v1471_v35  ;;  %v2132_v3 = vpack.c.bf16 %v2731_v37, %v2728_v33 }
 0x15a   : > { %v1403_v41 = vadd.f32 %v1402_v2, %v2571_v58  ;;  %v1535_v8 = vadd.f32 %v1534_v23, %v1472_v48  ;;  %2164 = vst [vmem:[%s2371_s26 + $0xf8] sm:$0xff] %v2132_v3   ;;  %v1490_v2 = vmul.f32 %v2662_v57, %v2662_v57  ;;  %v1494_v3 = vmul.f32 %v2731_v37, %v2731_v37 }
 0x15c   : > { %v1404_v45 = vadd.f32 %v1403_v41, %v2578_v63  ;;  %v1536_v47 = vadd.f32 %v1535_v8, %v1473_v0 }
 0x15e   : > { %v1537_v14 = vadd.f32 %v1536_v47, %v1474_v51  ;;  %v1405_v58 = vadd.f32 %v1404_v45, %v2611_v5  ;;  %v1479_v5 = vmul.f32 %v2453_v44, %v2453_v44 }
 0x160   : > { %v1538_v13 = vadd.f32 %v1537_v14, %v1475_v53  ;;  %v1406_v38 = vadd.f32 %v1405_v58, %v2617_v20  ;;  %v1480_v20 = vmul.f32 %v2459_v49, %v2459_v49 }
 0x162   : > { %v1539_v59 = vadd.f32 %v1538_v13, %v1476_v54  ;;  %v1407_v63 = vadd.f32 %v1406_v38, %v2653_v1  ;;  %v1481_v1 = vmul.f32 %v2489_v4, %v2489_v4 }
 0x164   : > { %v1540_v19 = vadd.f32 %v1539_v59, %v1477_v26  ;;  %v1408_v61 = vadd.f32 %v1407_v63, %v2659_v60  ;;  %v1482_v60 = vmul.f32 %v2495_v10, %v2495_v10 }
 0x166   : > { %v1409_v21 = vadd.f32 %v1408_v61, %v2453_v44  ;;  %v1541_v29 = vadd.f32 %v1540_v19, %v1478_v62  ;;  %v1483_v44 = vmul.f32 %v2524_v39, %v2524_v39 }
 0x168   : > { %v1410_v56 = vadd.f32 %v1409_v21, %v2459_v49  ;;  %v1542_v11 = vadd.f32 %v1541_v29, %v1479_v5  ;;  %v1484_v49 = vmul.f32 %v2532_v50, %v2532_v50 }
 0x16a   : > { %v1411_v17 = vadd.f32 %v1410_v56, %v2489_v4  ;;  %v1543_v25 = vadd.f32 %v1542_v11, %v1480_v20  ;;  %v1485_v4 = vmul.f32 %v2574_v55, %v2574_v55 }
 0x16c   : > { %v1412_v34 = vadd.f32 %v1411_v17, %v2495_v10  ;;  %v1544_v52 = vadd.f32 %v1543_v25, %v1481_v1  ;;  %v1486_v10 = vmul.f32 %v2581_v6, %v2581_v6 }
 0x16e   : > { %v1413_v16 = vadd.f32 %v1412_v34, %v2524_v39  ;;  %v1545_v15 = vadd.f32 %v1544_v52, %v1482_v60  ;;  %v1487_v39 = vmul.f32 %v2614_v42, %v2614_v42 }
 0x170   : > { %v1546_v24 = vadd.f32 %v1545_v15, %v1483_v44  ;;  %v1414_v27 = vadd.f32 %v1413_v16, %v2532_v50  ;;  %v1488_v50 = vmul.f32 %v2620_v46, %v2620_v46 }
 0x172   : > { %v1415_v32 = vadd.f32 %v1414_v27, %v2574_v55  ;;  %v1547_v28 = vadd.f32 %v1546_v24, %v1484_v49  ;;  %v1489_v55 = vmul.f32 %v2656_v7, %v2656_v7 }
 0x174   : > { %v1416_v22 = vadd.f32 %v1415_v32, %v2581_v6  ;;  %v1548_v30 = vadd.f32 %v1547_v28, %v1485_v4 }
 0x176   : > { %v1417_v43 = vadd.f32 %v1416_v22, %v2614_v42  ;;  %v1549_v31 = vadd.f32 %v1548_v30, %v1486_v10 }
 0x178   : > { %v1418_v35 = vadd.f32 %v1417_v43, %v2620_v46  ;;  %v1550_v18 = vadd.f32 %v1549_v31, %v1487_v39  ;;  %v1491_v46 = vmul.f32 %v2695_v36, %v2695_v36 }
 0x17a   : > { %v1419_v40 = vadd.f32 %v1418_v35, %v2656_v7  ;;  %v1551_v6 = vadd.f32 %v1550_v18, %v1488_v50  ;;  %v1492_v7 = vmul.f32 %v2698_v9, %v2698_v9 }
 0x17c   : > { %v1420_v48 = vadd.f32 %v1419_v40, %v2662_v57  ;;  %v1552_v42 = vadd.f32 %v1551_v6, %v1489_v55  ;;  %v1493_v57 = vmul.f32 %v2728_v33, %v2728_v33 }
 0x17e   : > { %v1553_v23 = vadd.f32 %v1552_v42, %v1490_v2  ;;  %v1421_v0 = vadd.f32 %v1420_v48, %v2695_v36 }
 0x180   : > { %v1554_v41 = vadd.f32 %v1553_v23, %v1491_v46  ;;  %v1422_v8 = vadd.f32 %v1421_v0, %v2698_v9 }
 0x182   : > { %v1555_v12 = vadd.f32 %v1554_v41, %v1492_v7  ;;  %v1423_v45 = vadd.f32 %v1422_v8, %v2728_v33 }
 0x184   : > { %v1556_v51 = vadd.f32 %v1555_v12, %v1493_v57  ;;  %v1424_v47 = vadd.f32 %v1423_v45, %v2731_v37 }
 0x186   : > { %v1425_v36 = vrot.slane %v1424_v47, 4  ;;  %v1557_v14 = vadd.f32 %v1556_v51, %v1494_v3 }
 0x188   : > { %v1426_v58 = vadd.f32 %v1425_v36, %v1424_v47  ;;  %v1558_v53 = vrot.slane %v1557_v14, 4 }
 0x18a   : > { %v1427_v13 = vrot.slane %v1426_v58, 2  ;;  %v1559_v9 = vadd.f32 %v1558_v53, %v1557_v14 }
 0x18c   : > { %v1428_v38 = vadd.f32 %v1427_v13, %v1426_v58  ;;  %v1560_v54 = vrot.slane %v1559_v9, 2 }
 0x18e   : > { %v1429_v59 = vrot.slane %v1428_v38, 1  ;;  %v1561_v63 = vadd.f32 %v1560_v54, %v1559_v9 }
 0x190   : > { %v1430_v33 = vadd.f32 %v1429_v59, %v1428_v38  ;;  %v1562_v26 = vrot.slane %v1561_v63, 1 }
 0x192   : > { %v1563_v37 = vadd.f32 %v1562_v26, %v1561_v63  ;;  %1564 = vst [vmem:[%s342_s30] sm:$0xff] %v1430_v33 }
 0x194   : > { %1565 = vst [vmem:[%s349_s8] sm:$0xff] %v1563_v37 }
 0x195 PF: > { %s16_s20 = sadd.s32 1, %s2236_s20   ;;  %s2822_s18 = smov %s2232_s19 }
 0x196   : > { %p13_p6 = scmp.ge.s32.totalorder %s16_s20, 4   ;;  %s2823_s19 = smov %s2825_s21 }
 0x198   :  { %15 = sbr.rel (!%p13_p6) target bundleno = 2 (0x2), region = 100 }

// kernel: discriminator_forward.6
= control target key start
LH: loop header
LB: loop body
LE: loop exit
PB: predicated region body
PF: predicated region fallthrough
CT: control target
= control target key end

     0   :  { %s1397_s1 = inlined_call_operand.vmem [shape: bf16[256,128], index: 1, kind: input, shape index: {}]   ;;  %s1398_s0 = inlined_call_operand.vmem [shape: bf16[192,256], index: 0, kind: input, shape index: {}]   ;;  %s1399_s2 = inlined_call_operand.vmem [shape: f32[1,128], index: 2, kind: input, shape index: {}]   ;;  %s1400_s3 = inlined_call_operand.vmem [shape: bf16[192,128], index: 3, kind: output, shape index: {0}]   ;;  %s1401_s4 = inlined_call_operand.vmem [shape: f32[8,128], index: 4, kind: output, shape index: {1}]   ;;  %s1402_s5 = inlined_call_operand.vmem [shape: f32[8,128], index: 5, kind: output, shape index: {2}]  }
   0x1   :  { %v917_v0 = vld [vmem:[%s1397_s1 + $0x38] sm:$0xff]  ;;  %v916_v2 = vld [vmem:[%s1397_s1 + $0x30] sm:$0xff]  ;;  %v915_v4 = vld [vmem:[%s1397_s1 + $0x28] sm:$0xff] }
   0x2   :  { %v925_v1 = vld [vmem:[%s1397_s1 + $0x78] sm:$0xff]  ;;  %341 = vmatpush.bf16.msra.mxu0 %v917_v0  ;;  %v924_v3 = vld [vmem:[%s1397_s1 + $0x70] sm:$0xff]  ;;  %997 = vmatpush.bf16.msra.mxu2 %v917_v0  ;;  %v923_v5 = vld [vmem:[%s1397_s1 + $0x68] sm:$0xff] }
   0x3   :  { %410 = vmatpush.bf16.msra.mxu1 %v925_v1  ;;  %1005 = vmatpush.bf16.msra.mxu3 %v925_v1  ;;  %v914_v6 = vld [vmem:[%s1397_s1 + $0x20] sm:$0xff]  ;;  %v913_v8 = vld [vmem:[%s1397_s1 + $0x18] sm:$0xff]  ;;  %v912_v10 = vld [vmem:[%s1397_s1 + $0x10] sm:$0xff] }
   0x4   :  { %v922_v7 = vld [vmem:[%s1397_s1 + $0x60] sm:$0xff]  ;;  %v921_v9 = vld [vmem:[%s1397_s1 + $0x58] sm:$0xff]  ;;  %v920_v11 = vld [vmem:[%s1397_s1 + $0x50] sm:$0xff] }
   0x5   :  { %v911_v12 = vld [vmem:[%s1397_s1 + $0x8] sm:$0xff]  ;;  %v910_v14 = vld [vmem:[%s1397_s1] sm:$0xff]  ;;  %v736_v28 = vld [vmem:[%s1398_s0 + $0x10] sm:$0xf] }
   0x6   :  { %342 = vmatpush.bf16.msra.mxu0 %v916_v2  ;;  %998 = vmatpush.bf16.msra.mxu2 %v916_v2  ;;  %v919_v13 = vld [vmem:[%s1397_s1 + $0x48] sm:$0xff]  ;;  %v918_v15 = vld [vmem:[%s1397_s1 + $0x40] sm:$0xff]  ;;  %v889_v29 = vld [vmem:[%s1398_s0 + $0x14] sm:$0xf0] }
   0x7   :  { %411 = vmatpush.bf16.msra.mxu1 %v924_v3  ;;  %1006 = vmatpush.bf16.msra.mxu3 %v924_v3  ;;  %v728_v16 = vld [vmem:[%s1398_s0] sm:$0xf]  ;;  %v887_v17 = vld [vmem:[%s1398_s0 + $0x4] sm:$0xf0]  ;;  %v886_v18 = vld [vmem:[%s1398_s0 + $0x4] sm:$0xf]  ;;  %v737_v36 = vor.u32 %v889_v29, %v736_v28 }
   0x8   :  { %v730_v19 = vld [vmem:[%s1398_s0 + $0x8] sm:$0xf0]  ;;  %v776_v20 = vld [vmem:[%s1398_s0 + $0x60] sm:$0xf]  ;;  %v899_v21 = vld [vmem:[%s1398_s0 + $0x64] sm:$0xf0]  ;;  %v729_v24 = vor.u32 %v887_v17, %v728_v16 }
   0x9   :  { %v898_v22 = vld [vmem:[%s1398_s0 + $0x64] sm:$0xf]  ;;  %v778_v23 = vld [vmem:[%s1398_s0 + $0x68] sm:$0xf0]  ;;  %v733_v25 = vor.u32 %v886_v18, %v730_v19  ;;  %v777_v26 = vor.u32 %v899_v21, %v776_v20  ;;  %v888_v30 = vld [vmem:[%s1398_s0 + $0x14] sm:$0xf] }
   0xa   :  { %343 = vmatpush.bf16.msra.mxu0 %v915_v4  ;;  %999 = vmatpush.bf16.msra.mxu2 %v915_v4  ;;  %v781_v27 = vor.u32 %v898_v22, %v778_v23  ;;  %v738_v31 = vld [vmem:[%s1398_s0 + $0x18] sm:$0xf0]  ;;  %v784_v32 = vld [vmem:[%s1398_s0 + $0x70] sm:$0xf]  ;;  %v901_v33 = vld [vmem:[%s1398_s0 + $0x74] sm:$0xf0] }
   0xb   :  { %412 = vmatpush.bf16.msra.mxu1 %v923_v5  ;;  %1007 = vmatpush.bf16.msra.mxu3 %v923_v5  ;;  %v900_v34 = vld [vmem:[%s1398_s0 + $0x74] sm:$0xf]  ;;  %v786_v35 = vld [vmem:[%s1398_s0 + $0x78] sm:$0xf0]  ;;  %v741_v37 = vor.u32 %v888_v30, %v738_v31  ;;  %v785_v38 = vor.u32 %v901_v33, %v784_v32  ;;  %v744_v40 = vld [vmem:[%s1398_s0 + $0x20] sm:$0xf] }
   0xc   :  { %v789_v39 = vor.u32 %v900_v34, %v786_v35  ;;  %v891_v41 = vld [vmem:[%s1398_s0 + $0x24] sm:$0xf0]  ;;  %v890_v42 = vld [vmem:[%s1398_s0 + $0x24] sm:$0xf]  ;;  %v746_v43 = vld [vmem:[%s1398_s0 + $0x28] sm:$0xf0] }
   0xd   :  { %v792_v44 = vld [vmem:[%s1398_s0 + $0x80] sm:$0xf]  ;;  %v903_v45 = vld [vmem:[%s1398_s0 + $0x84] sm:$0xf0]  ;;  %v902_v46 = vld [vmem:[%s1398_s0 + $0x84] sm:$0xf]  ;;  %v745_v48 = vor.u32 %v891_v41, %v744_v40  ;;  %v749_v49 = vor.u32 %v890_v42, %v746_v43 }
   0xe   :  { %344 = vmatpush.bf16.msra.mxu0 %v914_v6  ;;  %1000 = vmatpush.bf16.msra.mxu2 %v914_v6  ;;  %v794_v47 = vld [vmem:[%s1398_s0 + $0x88] sm:$0xf0]  ;;  %v793_v50 = vor.u32 %v903_v45, %v792_v44  ;;  %v752_v52 = vld [vmem:[%s1398_s0 + $0x30] sm:$0xf]  ;;  %v893_v53 = vld [vmem:[%s1398_s0 + $0x34] sm:$0xf0] }
   0xf   :  { %413 = vmatpush.bf16.msra.mxu1 %v922_v7  ;;  %1008 = vmatpush.bf16.msra.mxu3 %v922_v7  ;;  %v797_v51 = vor.u32 %v902_v46, %v794_v47  ;;  %v892_v54 = vld [vmem:[%s1398_s0 + $0x34] sm:$0xf]  ;;  %v754_v55 = vld [vmem:[%s1398_s0 + $0x38] sm:$0xf0]  ;;  %v800_v56 = vld [vmem:[%s1398_s0 + $0x90] sm:$0xf]  ;;  %v753_v60 = vor.u32 %v893_v53, %v752_v52 }
  0x10   :  { %v905_v57 = vld [vmem:[%s1398_s0 + $0x94] sm:$0xf0]  ;;  %v904_v58 = vld [vmem:[%s1398_s0 + $0x94] sm:$0xf]  ;;  %v802_v59 = vld [vmem:[%s1398_s0 + $0x98] sm:$0xf0]  ;;  %v757_v61 = vor.u32 %v892_v54, %v754_v55 }
  0x11   :  { %v801_v62 = vor.u32 %v905_v57, %v800_v56  ;;  %v805_v63 = vor.u32 %v904_v58, %v802_v59  ;;  %v760_v0 = vld [vmem:[%s1398_s0 + $0x40] sm:$0xf]  ;;  %v895_v1 = vld [vmem:[%s1398_s0 + $0x44] sm:$0xf0]  ;;  %v894_v2 = vld [vmem:[%s1398_s0 + $0x44] sm:$0xf] }
  0x12   :  { %345 = vmatpush.bf16.msra.mxu0 %v913_v8  ;;  %1001 = vmatpush.bf16.msra.mxu2 %v913_v8  ;;  %v762_v3 = vld [vmem:[%s1398_s0 + $0x48] sm:$0xf0]  ;;  %v808_v4 = vld [vmem:[%s1398_s0 + $0xa0] sm:$0xf]  ;;  %v907_v5 = vld [vmem:[%s1398_s0 + $0xa4] sm:$0xf0]  ;;  %v761_v8 = vor.u32 %v895_v1, %v760_v0 }
  0x13   :  { %414 = vmatpush.bf16.msra.mxu1 %v921_v9  ;;  %1009 = vmatpush.bf16.msra.mxu3 %v921_v9  ;;  %v906_v6 = vld [vmem:[%s1398_s0 + $0xa4] sm:$0xf]  ;;  %v810_v7 = vld [vmem:[%s1398_s0 + $0xa8] sm:$0xf0]  ;;  %v765_v9 = vor.u32 %v894_v2, %v762_v3  ;;  %v816_v16 = vld [vmem:[%s1398_s0 + $0xb0] sm:$0xf] }
  0x14   :  { %v909_v17 = vld [vmem:[%s1398_s0 + $0xb4] sm:$0xf0]  ;;  %v908_v18 = vld [vmem:[%s1398_s0 + $0xb4] sm:$0xf]  ;;  %v818_v19 = vld [vmem:[%s1398_s0 + $0xb8] sm:$0xf0] }
  0x15   :  { %v817_v22 = vor.u32 %v909_v17, %v816_v16  ;;  %v821_v23 = vor.u32 %v908_v18, %v818_v19 }
  0x16   :  { %346 = vmatpush.bf16.msra.mxu0 %v912_v10  ;;  %1002 = vmatpush.bf16.msra.mxu2 %v912_v10  ;;  %v809_v10 = vor.u32 %v907_v5, %v808_v4 }
  0x17   :  { %415 = vmatpush.bf16.msra.mxu1 %v920_v11  ;;  %1010 = vmatpush.bf16.msra.mxu3 %v920_v11  ;;  %v813_v11 = vor.u32 %v906_v6, %v810_v7 }
  0x1a   :  { %347 = vmatpush.bf16.msra.mxu0 %v911_v12  ;;  %1003 = vmatpush.bf16.msra.mxu2 %v911_v12  ;;  %v768_v12 = vld [vmem:[%s1398_s0 + $0x50] sm:$0xf] }
  0x1b   :  { %416 = vmatpush.bf16.msra.mxu1 %v919_v13  ;;  %1011 = vmatpush.bf16.msra.mxu3 %v919_v13  ;;  %v897_v13 = vld [vmem:[%s1398_s0 + $0x54] sm:$0xf0] }
  0x1c   :  { %v769_v20 = vor.u32 %v897_v13, %v768_v12 }
  0x1e   :  { %348 = vmatpush.bf16.msra.mxu0 %v910_v14  ;;  %1004 = vmatpush.bf16.msra.mxu2 %v910_v14  ;;  %v896_v14 = vld [vmem:[%s1398_s0 + $0x54] sm:$0xf] }
  0x1f   :  { %417 = vmatpush.bf16.msra.mxu1 %v918_v15  ;;  %1012 = vmatpush.bf16.msra.mxu3 %v918_v15  ;;  %v770_v15 = vld [vmem:[%s1398_s0 + $0x58] sm:$0xf0] }
  0x20   :  { %v773_v21 = vor.u32 %v896_v14, %v770_v15 }
  0x21   :  { %349 = vmatmul.bf16.vlgmr.msra.gmra.mxu0 %v729_v24  ;;  %379 = vmatmul.bf16.vlgmr.msra.gmra.mxu2 %v777_v26 }
  0x22   :  { %418 = vmatmul.bf16.vlgmr.msra.gmra.mxu1 %v733_v25  ;;  %448 = vmatmul.bf16.vlgmr.msra.gmra.mxu3 %v781_v27  ;;  %v1239_v27 = vld [vmem:[%s1399_s2] ss:$0 sm:$0xff] }
  0x31   :  { %354 = vmatmul.bf16.gmra.mxu0 %v737_v36  ;;  %384 = vmatmul.bf16.gmra.mxu2 %v785_v38 }
  0x32   :  { %423 = vmatmul.bf16.gmra.mxu1 %v741_v37  ;;  %453 = vmatmul.bf16.gmra.mxu3 %v789_v39 }
  0x41   :  { %359 = vmatmul.bf16.gmra.mxu0 %v745_v48  ;;  %389 = vmatmul.bf16.gmra.mxu2 %v793_v50 }
  0x42   :  { %428 = vmatmul.bf16.gmra.mxu1 %v749_v49  ;;  %458 = vmatmul.bf16.gmra.mxu3 %v797_v51 }
  0x51   :  { %364 = vmatmul.bf16.gmra.mxu0 %v753_v60  ;;  %394 = vmatmul.bf16.gmra.mxu2 %v801_v62 }
  0x52   :  { %433 = vmatmul.bf16.gmra.mxu1 %v757_v61  ;;  %463 = vmatmul.bf16.gmra.mxu3 %v805_v63 }
  0x61   :  { %369 = vmatmul.bf16.gmra.mxu0 %v761_v8  ;;  %399 = vmatmul.bf16.gmra.mxu2 %v809_v10 }
  0x62   :  { %438 = vmatmul.bf16.gmra.mxu1 %v765_v9  ;;  %468 = vmatmul.bf16.gmra.mxu3 %v813_v11 }
  0x71   :  { %374 = vmatmul.bf16.gmra.mxu0 %v769_v20  ;;  %404 = vmatmul.bf16.gmra.mxu2 %v817_v22 }
  0x72   :  { %443 = vmatmul.bf16.gmra.mxu1 %v773_v21  ;;  %473 = vmatmul.bf16.gmra.mxu3 %v821_v23 }
  0x9e   :  { %v350_v24 = vpop.f32.mrf.mxu0 }
  0x9f   :  { %v419_v25 = vpop.f32.mrf.mxu1 }
  0xa0   :  { %v420_v26 = vadd.f32 %v419_v25, %v350_v24 }
  0xa2   :  { %v1242_v33 = vadd.f32 %v1239_v27, %v420_v26 }
  0xa4   :  { %v380_v28 = vpop.f32.mrf.mxu2 }
  0xa5   :  { %v449_v29 = vpop.f32.mrf.mxu3 }
  0xa6   :  { %v352_v30 = vpop.f32.mrf.mxu0  ;;  %v450_v35 = vadd.f32 %v449_v29, %v380_v28 }
  0xa7   :  { %v421_v31 = vpop.f32.mrf.mxu1 }
  0xa8   :  { %v422_v32 = vadd.f32 %v421_v31, %v352_v30  ;;  %v1253_v41 = vadd.f32 %v1239_v27, %v450_v35 }
  0xaa   :  { %v1245_v34 = vadd.f32 %v1239_v27, %v422_v32 }
  0xac   :  { %v929_v36 = vpack.c.bf16 %v1245_v34, %v1242_v33  ;;  %v382_v37 = vpop.f32.mrf.mxu2 }
  0xad   :  { %v451_v38 = vpop.f32.mrf.mxu3 }
  0xae   :  { %930 = vst [vmem:[%s1400_s3] sm:$0xff] %v929_v36   ;;  %v355_v39 = vpop.f32.mrf.mxu0  ;;  %v452_v42 = vadd.f32 %v451_v38, %v382_v37  ;;  %v660_v38 = vmul.f32 %v1245_v34, %v1245_v34 }
  0xaf   :  { %v424_v40 = vpop.f32.mrf.mxu1 }
  0xb0   :  { %v1256_v43 = vadd.f32 %v1239_v27, %v452_v42  ;;  %v425_v45 = vadd.f32 %v424_v40, %v355_v39 }
  0xb2   :  { %v959_v44 = vpack.c.bf16 %v1256_v43, %v1253_v41  ;;  %v1264_v51 = vadd.f32 %v1239_v27, %v425_v45 }
  0xb4   :  { %991 = vst [vmem:[%s1400_s3 + $0x30] sm:$0xff] %v959_v44   ;;  %v385_v46 = vpop.f32.mrf.mxu2  ;;  %v659_v44 = vmul.f32 %v1242_v33, %v1242_v33 }
  0xb5   :  { %v454_v47 = vpop.f32.mrf.mxu3 }
  0xb6   :  { %v357_v48 = vpop.f32.mrf.mxu0  ;;  %v455_v53 = vadd.f32 %v454_v47, %v385_v46  ;;  %v630_v47 = vadd.f32 %v1245_v34, %v1242_v33 }
  0xb7   :  { %v426_v49 = vpop.f32.mrf.mxu1 }
  0xb8   :  { %v427_v50 = vadd.f32 %v426_v49, %v357_v48  ;;  %v1275_v59 = vadd.f32 %v1239_v27, %v455_v53  ;;  %v661_v48 = vmul.f32 %v1264_v51, %v1264_v51  ;;  %v631_v53 = vadd.f32 %v630_v47, %v1264_v51 }
  0xba   :  { %v1267_v52 = vadd.f32 %v1239_v27, %v427_v50  ;;  %v683_v50 = vadd.f32 %v660_v38, %v659_v44 }
  0xbc   :  { %v934_v54 = vpack.c.bf16 %v1267_v52, %v1264_v51  ;;  %v387_v55 = vpop.f32.mrf.mxu2 }
  0xbd   :  { %v456_v56 = vpop.f32.mrf.mxu3 }
  0xbe   :  { %986 = vst [vmem:[%s1400_s3 + $0x8] sm:$0xff] %v934_v54   ;;  %v360_v57 = vpop.f32.mrf.mxu0  ;;  %v457_v60 = vadd.f32 %v456_v56, %v387_v55  ;;  %v662_v54 = vmul.f32 %v1267_v52, %v1267_v52 }
  0xbf   :  { %v429_v58 = vpop.f32.mrf.mxu1 }
  0xc0   :  { %v1278_v61 = vadd.f32 %v1239_v27, %v457_v60  ;;  %v430_v63 = vadd.f32 %v429_v58, %v360_v57  ;;  %v684_v58 = vadd.f32 %v683_v50, %v661_v48  ;;  %v632_v60 = vadd.f32 %v631_v53, %v1267_v52 }
  0xc2   :  { %v964_v62 = vpack.c.bf16 %v1278_v61, %v1275_v59  ;;  %v562_v5 = vadd.f32 %v1239_v27, %v430_v63  ;;  %v685_v34 = vadd.f32 %v684_v58, %v662_v54 }
  0xc4   :  { %992 = vst [vmem:[%s1400_s3 + $0x38] sm:$0xff] %v964_v62   ;;  %v390_v0 = vpop.f32.mrf.mxu2  ;;  %v663_v62 = vmul.f32 %v562_v5, %v562_v5  ;;  %v633_v63 = vadd.f32 %v632_v60, %v562_v5  ;;  %v673_v60 = vmul.f32 %v1275_v59, %v1275_v59 }
  0xc5   :  { %v459_v1 = vpop.f32.mrf.mxu3 }
  0xc6   :  { %v362_v2 = vpop.f32.mrf.mxu0  ;;  %v460_v7 = vadd.f32 %v459_v1, %v390_v0  ;;  %v686_v52 = vadd.f32 %v685_v34, %v663_v62  ;;  %v674_v34 = vmul.f32 %v1278_v61, %v1278_v61 }
  0xc7   :  { %v431_v3 = vpop.f32.mrf.mxu1 }
  0xc8   :  { %v432_v4 = vadd.f32 %v431_v3, %v362_v2  ;;  %v1294_v13 = vadd.f32 %v1239_v27, %v460_v7 }
  0xca   :  { %v1287_v6 = vadd.f32 %v1239_v27, %v432_v4 }
  0xcc   :  { %v939_v8 = vpack.c.bf16 %v1287_v6, %v562_v5  ;;  %v392_v9 = vpop.f32.mrf.mxu2  ;;  %v664_v0 = vmul.f32 %v1287_v6, %v1287_v6 }
  0xcd   :  { %v461_v10 = vpop.f32.mrf.mxu3 }
  0xce   :  { %987 = vst [vmem:[%s1400_s3 + $0x10] sm:$0xff] %v939_v8   ;;  %v365_v11 = vpop.f32.mrf.mxu0  ;;  %v462_v14 = vadd.f32 %v461_v10, %v392_v9  ;;  %v634_v8 = vadd.f32 %v633_v63, %v1287_v6 }
  0xcf   :  { %v434_v12 = vpop.f32.mrf.mxu1 }
  0xd0   :  { %v1297_v15 = vadd.f32 %v1239_v27, %v462_v14  ;;  %v435_v17 = vadd.f32 %v434_v12, %v365_v11  ;;  %v687_v11 = vadd.f32 %v686_v52, %v664_v0 }
  0xd2   :  { %v969_v16 = vpack.c.bf16 %v1297_v15, %v1294_v13  ;;  %v564_v23 = vadd.f32 %v1239_v27, %v435_v17 }
  0xd4   :  { %993 = vst [vmem:[%s1400_s3 + $0x40] sm:$0xff] %v969_v16   ;;  %v395_v18 = vpop.f32.mrf.mxu2  ;;  %v665_v9 = vmul.f32 %v564_v23, %v564_v23  ;;  %v635_v12 = vadd.f32 %v634_v8, %v564_v23 }
  0xd5   :  { %v464_v19 = vpop.f32.mrf.mxu3 }
  0xd6   :  { %v367_v20 = vpop.f32.mrf.mxu0  ;;  %v465_v25 = vadd.f32 %v464_v19, %v395_v18  ;;  %v688_v17 = vadd.f32 %v687_v11, %v665_v9 }
  0xd7   :  { %v436_v21 = vpop.f32.mrf.mxu1 }
  0xd8   :  { %v437_v22 = vadd.f32 %v436_v21, %v367_v20  ;;  %v1310_v32 = vadd.f32 %v1239_v27, %v465_v25 }
  0xda   :  { %v565_v24 = vadd.f32 %v1239_v27, %v437_v22 }
  0xdc   :  { %v944_v26 = vpack.c.bf16 %v565_v24, %v564_v23  ;;  %v397_v28 = vpop.f32.mrf.mxu2  ;;  %v666_v14 = vmul.f32 %v565_v24, %v565_v24  ;;  %v636_v18 = vadd.f32 %v635_v12, %v565_v24 }
  0xdd   :  { %v466_v29 = vpop.f32.mrf.mxu3 }
  0xde   :  { %988 = vst [vmem:[%s1400_s3 + $0x18] sm:$0xff] %v944_v26   ;;  %v370_v30 = vpop.f32.mrf.mxu0  ;;  %v467_v35 = vadd.f32 %v466_v29, %v397_v28  ;;  %v689_v6 = vadd.f32 %v688_v17, %v666_v14 }
  0xdf   :  { %v439_v31 = vpop.f32.mrf.mxu1 }
  0xe0   :  { %v1313_v36 = vadd.f32 %v1239_v27, %v467_v35  ;;  %v440_v39 = vadd.f32 %v439_v31, %v370_v30 }
  0xe2   :  { %v974_v37 = vpack.c.bf16 %v1313_v36, %v1310_v32  ;;  %v566_v55 = vadd.f32 %v1239_v27, %v440_v39  ;;  %v678_v52 = vmul.f32 %v1313_v36, %v1313_v36 }
  0xe4   :  { %994 = vst [vmem:[%s1400_s3 + $0x48] sm:$0xff] %v974_v37   ;;  %v400_v40 = vpop.f32.mrf.mxu2  ;;  %v667_v19 = vmul.f32 %v566_v55, %v566_v55  ;;  %v637_v21 = vadd.f32 %v636_v18, %v566_v55 }
  0xe5   :  { %v469_v42 = vpop.f32.mrf.mxu3 }
  0xe6   :  { %v372_v45 = vpop.f32.mrf.mxu0  ;;  %v470_v57 = vadd.f32 %v469_v42, %v400_v40  ;;  %v690_v29 = vadd.f32 %v689_v6, %v667_v19 }
  0xe7   :  { %v441_v46 = vpop.f32.mrf.mxu1 }
  0xe8   :  { %v442_v49 = vadd.f32 %v441_v46, %v372_v45  ;;  %v1340_v4 = vadd.f32 %v1239_v27, %v470_v57  ;;  %v671_v46 = vmul.f32 %v1253_v41, %v1253_v41 }
  0xea   :  { %v567_v56 = vadd.f32 %v1239_v27, %v442_v49 }
  0xec   :  { %v949_v33 = vpack.c.bf16 %v567_v56, %v566_v55  ;;  %v402_v51 = vpop.f32.mrf.mxu2  ;;  %v668_v22 = vmul.f32 %v567_v56, %v567_v56  ;;  %v638_v30 = vadd.f32 %v637_v21, %v567_v56  ;;  %v672_v55 = vmul.f32 %v1256_v43, %v1256_v43 }
  0xed   :  { %v471_v1 = vpop.f32.mrf.mxu3 }
  0xee   :  { %989 = vst [vmem:[%s1400_s3 + $0x20] sm:$0xff] %v949_v33   ;;  %v375_v2 = vpop.f32.mrf.mxu0  ;;  %v472_v7 = vadd.f32 %v471_v1, %v402_v51  ;;  %v691_v37 = vadd.f32 %v690_v29, %v668_v22 }
  0xef   :  { %v444_v3 = vpop.f32.mrf.mxu1 }
  0xf0   :  { %v445_v5 = vadd.f32 %v444_v3, %v375_v2  ;;  %v1344_v10 = vadd.f32 %v1239_v27, %v472_v7 }
  0xf2   :  { %v979_v16 = vpack.c.bf16 %v1344_v10, %v1340_v4  ;;  %v568_v20 = vadd.f32 %v1239_v27, %v445_v5  ;;  %v680_v12 = vmul.f32 %v1344_v10, %v1344_v10 }
  0xf4   :  { %995 = vst [vmem:[%s1400_s3 + $0x50] sm:$0xff] %v979_v16   ;;  %v405_v25 = vpop.f32.mrf.mxu2  ;;  %v669_v31 = vmul.f32 %v568_v20, %v568_v20  ;;  %v639_v24 = vadd.f32 %v638_v30, %v568_v20 }
  0xf5   :  { %v474_v26 = vpop.f32.mrf.mxu3 }
  0xf6   :  { %v377_v28 = vpop.f32.mrf.mxu0  ;;  %v475_v39 = vadd.f32 %v474_v26, %v405_v25  ;;  %v692_v40 = vadd.f32 %v691_v37, %v669_v31 }
  0xf7   :  { %v446_v23 = vpop.f32.mrf.mxu1 }
  0xf8   :  { %v447_v35 = vadd.f32 %v446_v23, %v377_v28  ;;  %v580_v53 = vadd.f32 %v1239_v27, %v475_v39 }
  0xfa   :  { %v569_v38 = vadd.f32 %v1239_v27, %v447_v35  ;;  %v681_v17 = vmul.f32 %v580_v53, %v580_v53 }
  0xfc   :  { %v954_v42 = vpack.c.bf16 %v569_v38, %v568_v20  ;;  %v640_v44 = vadd.f32 %v639_v24, %v569_v38  ;;  %v670_v45 = vmul.f32 %v569_v38, %v569_v38  ;;  %v407_v49 = vpop.f32.mrf.mxu2 }
  0xfd   :  { %v476_v50 = vpop.f32.mrf.mxu3 }
  0xfe   :  { %990 = vst [vmem:[%s1400_s3 + $0x28] sm:$0xff] %v954_v42   ;;  %v641_v47 = vadd.f32 %v640_v44, %v1253_v41  ;;  %v693_v48 = vadd.f32 %v692_v40, %v670_v45  ;;  %v477_v54 = vadd.f32 %v476_v50, %v407_v49 }
 0x100   :  { %v642_v56 = vadd.f32 %v641_v47, %v1256_v43  ;;  %v694_v57 = vadd.f32 %v693_v48, %v671_v46  ;;  %v581_v58 = vadd.f32 %v1239_v27, %v477_v54  ;;  %v675_v27 = vmul.f32 %v1294_v13, %v1294_v13 }
 0x102   :  { %v643_v62 = vadd.f32 %v642_v56, %v1275_v59  ;;  %v695_v41 = vadd.f32 %v694_v57, %v672_v55  ;;  %v984_v33 = vpack.c.bf16 %v581_v58, %v580_v53  ;;  %v676_v59 = vmul.f32 %v1297_v15, %v1297_v15 }
 0x103   :  { %v682_v20 = vmul.f32 %v581_v58, %v581_v58 }
 0x104   :  { %v644_v63 = vadd.f32 %v643_v62, %v1278_v61  ;;  %v696_v0 = vadd.f32 %v695_v41, %v673_v60  ;;  %996 = vst [vmem:[%s1400_s3 + $0x58] sm:$0xff] %v984_v33   ;;  %v677_v61 = vmul.f32 %v1310_v32, %v1310_v32 }
 0x106   :  { %v697_v43 = vadd.f32 %v696_v0, %v674_v34  ;;  %v645_v51 = vadd.f32 %v644_v63, %v1294_v13  ;;  %v679_v13 = vmul.f32 %v1340_v4, %v1340_v4 }
 0x108   :  { %v646_v1 = vadd.f32 %v645_v51, %v1297_v15  ;;  %v698_v2 = vadd.f32 %v697_v43, %v675_v27 }
 0x10a   :  { %v647_v3 = vadd.f32 %v646_v1, %v1310_v32  ;;  %v699_v7 = vadd.f32 %v698_v2, %v676_v59 }
 0x10c   :  { %v648_v8 = vadd.f32 %v647_v3, %v1313_v36  ;;  %v700_v9 = vadd.f32 %v699_v7, %v677_v61 }
 0x10e   :  { %v649_v5 = vadd.f32 %v648_v8, %v1340_v4  ;;  %v701_v11 = vadd.f32 %v700_v9, %v678_v52 }
 0x110   :  { %v650_v15 = vadd.f32 %v649_v5, %v1344_v10  ;;  %v702_v14 = vadd.f32 %v701_v11, %v679_v13 }
 0x112   :  { %v703_v32 = vadd.f32 %v702_v14, %v680_v12  ;;  %v651_v16 = vadd.f32 %v650_v15, %v580_v53 }
 0x114   :  { %v704_v18 = vadd.f32 %v703_v32, %v681_v17  ;;  %v652_v19 = vadd.f32 %v651_v16, %v581_v58 }
 0x116   :  { %v653_v36 = vrot.slane %v652_v19, 4  ;;  %v705_v6 = vadd.f32 %v704_v18, %v682_v20 }
 0x118   :  { %v654_v21 = vadd.f32 %v653_v36, %v652_v19  ;;  %v706_v22 = vrot.slane %v705_v6, 4 }
 0x11a   :  { %v655_v25 = vrot.slane %v654_v21, 2  ;;  %v707_v26 = vadd.f32 %v706_v22, %v705_v6 }
 0x11c   :  { %v656_v4 = vadd.f32 %v655_v25, %v654_v21  ;;  %v708_v28 = vrot.slane %v707_v26, 2 }
 0x11e   :  { %v657_v23 = vrot.slane %v656_v4, 1  ;;  %v709_v29 = vadd.f32 %v708_v28, %v707_v26 }
 0x120   :  { %v658_v30 = vadd.f32 %v657_v23, %v656_v4  ;;  %v710_v31 = vrot.slane %v709_v29, 1 }
 0x122   :  { %v711_v10 = vadd.f32 %v710_v31, %v709_v29  ;;  %712 = vst [vmem:[%s1401_s4] sm:$0xff] %v658_v30 }
 0x124   :  { %713 = vst [vmem:[%s1402_s5] sm:$0xff] %v711_v10 }

// kernel: discriminator_forward.7
= control target key start
LH: loop header
LB: loop body
LE: loop exit
PB: predicated region body
PF: predicated region fallthrough
CT: control target
= control target key end

     0   :  { %s996_s1 = inlined_call_operand.vmem [shape: bf16[512,128], index: 1, kind: input, shape index: {}]   ;;  %s997_s0 = inlined_call_operand.vmem [shape: bf16[48,512], index: 0, kind: input, shape index: {}]   ;;  %s998_s2 = inlined_call_operand.vmem [shape: f32[1,128], index: 2, kind: input, shape index: {}]   ;;  %s999_s3 = inlined_call_operand.vmem [shape: bf16[48,128], index: 3, kind: output, shape index: {0}]   ;;  %s1000_s4 = inlined_call_operand.vmem [shape: f32[8,128], index: 4, kind: output, shape index: {1}]   ;;  %s1001_s5 = inlined_call_operand.vmem [shape: f32[8,128], index: 5, kind: output, shape index: {2}]  }
   0x1   :  { %v737_v0 = vld [vmem:[%s996_s1 + $0x38] sm:$0xff]  ;;  %v736_v4 = vld [vmem:[%s996_s1 + $0x30] sm:$0xff]  ;;  %v735_v8 = vld [vmem:[%s996_s1 + $0x28] sm:$0xff] }
   0x2   :  { %v745_v1 = vld [vmem:[%s996_s1 + $0x78] sm:$0xff]  ;;  %361 = vmatpush.bf16.msra.mxu0 %v737_v0  ;;  %v744_v5 = vld [vmem:[%s996_s1 + $0x70] sm:$0xff]  ;;  %v743_v9 = vld [vmem:[%s996_s1 + $0x68] sm:$0xff] }
   0x3   :  { %v753_v2 = vld [vmem:[%s996_s1 + $0xb8] sm:$0xff]  ;;  %385 = vmatpush.bf16.msra.mxu1 %v745_v1  ;;  %v752_v6 = vld [vmem:[%s996_s1 + $0xb0] sm:$0xff]  ;;  %v751_v10 = vld [vmem:[%s996_s1 + $0xa8] sm:$0xff] }
   0x4   :  { %v761_v3 = vld [vmem:[%s996_s1 + $0xf8] sm:$0xff]  ;;  %409 = vmatpush.bf16.msra.mxu2 %v753_v2  ;;  %v760_v7 = vld [vmem:[%s996_s1 + $0xf0] sm:$0xff]  ;;  %v759_v11 = vld [vmem:[%s996_s1 + $0xe8] sm:$0xff] }
   0x5   :  { %433 = vmatpush.bf16.msra.mxu3 %v761_v3  ;;  %v734_v12 = vld [vmem:[%s996_s1 + $0x20] sm:$0xff]  ;;  %v733_v16 = vld [vmem:[%s996_s1 + $0x18] sm:$0xff]  ;;  %v732_v20 = vld [vmem:[%s996_s1 + $0x10] sm:$0xff] }
   0x6   :  { %362 = vmatpush.bf16.msra.mxu0 %v736_v4  ;;  %v742_v13 = vld [vmem:[%s996_s1 + $0x60] sm:$0xff]  ;;  %v741_v17 = vld [vmem:[%s996_s1 + $0x58] sm:$0xff]  ;;  %v740_v21 = vld [vmem:[%s996_s1 + $0x50] sm:$0xff] }
   0x7   :  { %386 = vmatpush.bf16.msra.mxu1 %v744_v5  ;;  %v750_v14 = vld [vmem:[%s996_s1 + $0xa0] sm:$0xff]  ;;  %v749_v18 = vld [vmem:[%s996_s1 + $0x98] sm:$0xff]  ;;  %v748_v22 = vld [vmem:[%s996_s1 + $0x90] sm:$0xff] }
   0x8   :  { %410 = vmatpush.bf16.msra.mxu2 %v752_v6  ;;  %v758_v15 = vld [vmem:[%s996_s1 + $0xe0] sm:$0xff]  ;;  %v757_v19 = vld [vmem:[%s996_s1 + $0xd8] sm:$0xff]  ;;  %v756_v23 = vld [vmem:[%s996_s1 + $0xd0] sm:$0xff] }
   0x9   :  { %434 = vmatpush.bf16.msra.mxu3 %v760_v7  ;;  %v731_v24 = vld [vmem:[%s996_s1 + $0x8] sm:$0xff]  ;;  %v730_v28 = vld [vmem:[%s996_s1] sm:$0xff]  ;;  %v720_v33 = vld [vmem:[%s997_s0 + $0xc] sm:$0xf0] }
   0xa   :  { %363 = vmatpush.bf16.msra.mxu0 %v735_v8  ;;  %v739_v25 = vld [vmem:[%s996_s1 + $0x48] sm:$0xff]  ;;  %v738_v29 = vld [vmem:[%s996_s1 + $0x40] sm:$0xff]  ;;  %v546_v35 = vld [vmem:[%s997_s0 + $0x10] sm:$0xf0] }
   0xb   :  { %387 = vmatpush.bf16.msra.mxu1 %v743_v9  ;;  %v747_v26 = vld [vmem:[%s996_s1 + $0x88] sm:$0xff]  ;;  %v746_v30 = vld [vmem:[%s996_s1 + $0x80] sm:$0xff]  ;;  %v721_v37 = vld [vmem:[%s997_s0 + $0x14] sm:$0xf0] }
   0xc   :  { %411 = vmatpush.bf16.msra.mxu2 %v751_v10  ;;  %v755_v27 = vld [vmem:[%s996_s1 + $0xc8] sm:$0xff]  ;;  %v754_v31 = vld [vmem:[%s996_s1 + $0xc0] sm:$0xff]  ;;  %v554_v39 = vld [vmem:[%s997_s0 + $0x18] sm:$0xf0] }
   0xd   :  { %435 = vmatpush.bf16.msra.mxu3 %v759_v11  ;;  %v544_v32 = vld [vmem:[%s997_s0] sm:$0xf]  ;;  %v718_v34 = vld [vmem:[%s997_s0 + $0x4] sm:$0xf]  ;;  %v552_v36 = vld [vmem:[%s997_s0 + $0x8] sm:$0xf] }
   0xe   :  { %364 = vmatpush.bf16.msra.mxu0 %v734_v12  ;;  %v719_v38 = vld [vmem:[%s997_s0 + $0xc] sm:$0xf]  ;;  %v545_v40 = vor.u32 %v720_v33, %v544_v32  ;;  %v549_v41 = vor.u32 %v718_v34, %v546_v35  ;;  %v553_v42 = vor.u32 %v721_v37, %v552_v36  ;;  %v560_v44 = vld [vmem:[%s997_s0 + $0x20] sm:$0xf]  ;;  %v724_v45 = vld [vmem:[%s997_s0 + $0x2c] sm:$0xf0] }
   0xf   :  { %388 = vmatpush.bf16.msra.mxu1 %v742_v13  ;;  %v557_v43 = vor.u32 %v719_v38, %v554_v39  ;;  %v722_v46 = vld [vmem:[%s997_s0 + $0x24] sm:$0xf]  ;;  %v562_v47 = vld [vmem:[%s997_s0 + $0x30] sm:$0xf0]  ;;  %v568_v48 = vld [vmem:[%s997_s0 + $0x28] sm:$0xf]  ;;  %v561_v52 = vor.u32 %v724_v45, %v560_v44 }
  0x10   :  { %412 = vmatpush.bf16.msra.mxu2 %v750_v14  ;;  %v725_v49 = vld [vmem:[%s997_s0 + $0x34] sm:$0xf0]  ;;  %v723_v50 = vld [vmem:[%s997_s0 + $0x2c] sm:$0xf]  ;;  %v570_v51 = vld [vmem:[%s997_s0 + $0x38] sm:$0xf0]  ;;  %v565_v53 = vor.u32 %v722_v46, %v562_v47 }
  0x11   :  { %436 = vmatpush.bf16.msra.mxu3 %v758_v15  ;;  %v569_v54 = vor.u32 %v725_v49, %v568_v48  ;;  %v573_v55 = vor.u32 %v723_v50, %v570_v51  ;;  %v576_v56 = vld [vmem:[%s997_s0 + $0x40] sm:$0xf]  ;;  %v728_v57 = vld [vmem:[%s997_s0 + $0x4c] sm:$0xf0]  ;;  %v726_v58 = vld [vmem:[%s997_s0 + $0x44] sm:$0xf] }
  0x12   :  { %365 = vmatpush.bf16.msra.mxu0 %v733_v16  ;;  %v578_v59 = vld [vmem:[%s997_s0 + $0x50] sm:$0xf0]  ;;  %v584_v60 = vld [vmem:[%s997_s0 + $0x48] sm:$0xf]  ;;  %v729_v61 = vld [vmem:[%s997_s0 + $0x54] sm:$0xf0]  ;;  %v577_v0 = vor.u32 %v728_v57, %v576_v56 }
  0x13   :  { %389 = vmatpush.bf16.msra.mxu1 %v741_v17  ;;  %v727_v62 = vld [vmem:[%s997_s0 + $0x4c] sm:$0xf]  ;;  %v586_v63 = vld [vmem:[%s997_s0 + $0x58] sm:$0xf0]  ;;  %v581_v1 = vor.u32 %v726_v58, %v578_v59  ;;  %v585_v2 = vor.u32 %v729_v61, %v584_v60  ;;  %v779_v16 = vld [vmem:[%s998_s2] ss:$0 sm:$0xff] }
  0x14   :  { %413 = vmatpush.bf16.msra.mxu2 %v749_v18  ;;  %v589_v3 = vor.u32 %v727_v62, %v586_v63 }
  0x15   :  { %437 = vmatpush.bf16.msra.mxu3 %v757_v19 }
  0x16   :  { %366 = vmatpush.bf16.msra.mxu0 %v732_v20 }
  0x17   :  { %390 = vmatpush.bf16.msra.mxu1 %v740_v21 }
  0x18   :  { %414 = vmatpush.bf16.msra.mxu2 %v748_v22 }
  0x19   :  { %438 = vmatpush.bf16.msra.mxu3 %v756_v23 }
  0x1a   :  { %367 = vmatpush.bf16.msra.mxu0 %v731_v24 }
  0x1b   :  { %391 = vmatpush.bf16.msra.mxu1 %v739_v25 }
  0x1c   :  { %415 = vmatpush.bf16.msra.mxu2 %v747_v26 }
  0x1d   :  { %439 = vmatpush.bf16.msra.mxu3 %v755_v27 }
  0x1e   :  { %368 = vmatpush.bf16.msra.mxu0 %v730_v28 }
  0x1f   :  { %392 = vmatpush.bf16.msra.mxu1 %v738_v29 }
  0x20   :  { %416 = vmatpush.bf16.msra.mxu2 %v746_v30 }
  0x21   :  { %440 = vmatpush.bf16.msra.mxu3 %v754_v31  ;;  %369 = vmatmul.bf16.vlgmr.msra.gmra.mxu0 %v545_v40 }
  0x22   :  { %393 = vmatmul.bf16.vlgmr.msra.gmra.mxu1 %v549_v41 }
  0x23   :  { %417 = vmatmul.bf16.vlgmr.msra.gmra.mxu2 %v553_v42 }
  0x24   :  { %441 = vmatmul.bf16.vlgmr.msra.gmra.mxu3 %v557_v43 }
  0x31   :  { %374 = vmatmul.bf16.gmra.mxu0 %v561_v52 }
  0x32   :  { %398 = vmatmul.bf16.gmra.mxu1 %v565_v53 }
  0x33   :  { %422 = vmatmul.bf16.gmra.mxu2 %v569_v54 }
  0x34   :  { %446 = vmatmul.bf16.gmra.mxu3 %v573_v55 }
  0x41   :  { %379 = vmatmul.bf16.gmra.mxu0 %v577_v0 }
  0x42   :  { %403 = vmatmul.bf16.gmra.mxu1 %v581_v1 }
  0x43   :  { %427 = vmatmul.bf16.gmra.mxu2 %v585_v2 }
  0x44   :  { %451 = vmatmul.bf16.gmra.mxu3 %v589_v3 }
  0x9e   :  { %v370_v4 = vpop.f32.mrf.mxu0 }
  0x9f   :  { %v394_v5 = vpop.f32.mrf.mxu1 }
  0xa0   :  { %v395_v8 = vadd.f32 %v394_v5, %v370_v4 }
  0xa6   :  { %v418_v6 = vpop.f32.mrf.mxu2  ;;  %v372_v9 = vpop.f32.mrf.mxu0 }
  0xa7   :  { %v442_v7 = vpop.f32.mrf.mxu3  ;;  %v396_v10 = vpop.f32.mrf.mxu1  ;;  %v419_v11 = vadd.f32 %v418_v6, %v395_v8 }
  0xa8   :  { %v397_v12 = vadd.f32 %v396_v10, %v372_v9 }
  0xa9   :  { %v443_v15 = vadd.f32 %v442_v7, %v419_v11 }
  0xab   :  { %v482_v21 = vadd.f32 %v779_v16, %v443_v15 }
  0xad   :  { %v511_v49 = vmul.f32 %v482_v21, %v482_v21 }
  0xae   :  { %v420_v13 = vpop.f32.mrf.mxu2  ;;  %v375_v18 = vpop.f32.mrf.mxu0 }
  0xaf   :  { %v444_v14 = vpop.f32.mrf.mxu3  ;;  %v421_v17 = vadd.f32 %v420_v13, %v397_v12  ;;  %v399_v19 = vpop.f32.mrf.mxu1 }
  0xb0   :  { %v400_v26 = vadd.f32 %v399_v19, %v375_v18 }
  0xb1   :  { %v445_v20 = vadd.f32 %v444_v14, %v421_v17 }
  0xb3   :  { %v483_v22 = vadd.f32 %v779_v16, %v445_v20 }
  0xb5   :  { %v765_v23 = vpack.c.bf16 %v483_v22, %v482_v21  ;;  %v512_v48 = vmul.f32 %v483_v22, %v483_v22  ;;  %v500_v50 = vadd.f32 %v483_v22, %v482_v21 }
  0xb6   :  { %v423_v24 = vpop.f32.mrf.mxu2  ;;  %v377_v27 = vpop.f32.mrf.mxu0 }
  0xb7   :  { %v447_v25 = vpop.f32.mrf.mxu3  ;;  %766 = vst [vmem:[%s999_s3] sm:$0xff] %v765_v23   ;;  %v401_v28 = vpop.f32.mrf.mxu1  ;;  %v424_v29 = vadd.f32 %v423_v24, %v400_v26  ;;  %v517_v55 = vadd.f32 %v512_v48, %v511_v49 }
  0xb8   :  { %v402_v30 = vadd.f32 %v401_v28, %v377_v27 }
  0xb9   :  { %v448_v33 = vadd.f32 %v447_v25, %v424_v29 }
  0xbb   :  { %v484_v38 = vadd.f32 %v779_v16, %v448_v33 }
  0xbd   :  { %v513_v51 = vmul.f32 %v484_v38, %v484_v38  ;;  %v501_v56 = vadd.f32 %v500_v50, %v484_v38 }
  0xbe   :  { %v425_v31 = vpop.f32.mrf.mxu2  ;;  %v380_v35 = vpop.f32.mrf.mxu0 }
  0xbf   :  { %v449_v32 = vpop.f32.mrf.mxu3  ;;  %v426_v34 = vadd.f32 %v425_v31, %v402_v30  ;;  %v404_v36 = vpop.f32.mrf.mxu1  ;;  %v518_v60 = vadd.f32 %v517_v55, %v513_v51 }
  0xc0   :  { %v405_v40 = vadd.f32 %v404_v36, %v380_v35 }
  0xc1   :  { %v450_v37 = vadd.f32 %v449_v32, %v426_v34 }
  0xc3   :  { %v485_v39 = vadd.f32 %v779_v16, %v450_v37 }
  0xc5   :  { %v770_v41 = vpack.c.bf16 %v485_v39, %v484_v38  ;;  %v514_v57 = vmul.f32 %v485_v39, %v485_v39  ;;  %v502_v61 = vadd.f32 %v501_v56, %v485_v39 }
  0xc6   :  { %v428_v42 = vpop.f32.mrf.mxu2  ;;  %v382_v46 = vpop.f32.mrf.mxu0 }
  0xc7   :  { %v452_v43 = vpop.f32.mrf.mxu3  ;;  %777 = vst [vmem:[%s999_s3 + $0x8] sm:$0xff] %v770_v41   ;;  %v429_v44 = vadd.f32 %v428_v42, %v405_v40  ;;  %v406_v47 = vpop.f32.mrf.mxu1  ;;  %v519_v0 = vadd.f32 %v518_v60, %v514_v57 }
  0xc8   :  { %v407_v53 = vadd.f32 %v406_v47, %v382_v46 }
  0xc9   :  { %v453_v45 = vadd.f32 %v452_v43, %v429_v44 }
  0xcb   :  { %v486_v52 = vadd.f32 %v779_v16, %v453_v45 }
  0xcd   :  { %v515_v62 = vmul.f32 %v486_v52, %v486_v52  ;;  %v503_v1 = vadd.f32 %v502_v61, %v486_v52 }
  0xce   :  { %v430_v54 = vpop.f32.mrf.mxu2 }
  0xcf   :  { %v431_v58 = vadd.f32 %v430_v54, %v407_v53  ;;  %v454_v59 = vpop.f32.mrf.mxu3  ;;  %v520_v3 = vadd.f32 %v519_v0, %v515_v62 }
  0xd1   :  { %v455_v63 = vadd.f32 %v454_v59, %v431_v58 }
  0xd3   :  { %v487_v2 = vadd.f32 %v779_v16, %v455_v63 }
  0xd5   :  { %v775_v4 = vpack.c.bf16 %v487_v2, %v486_v52  ;;  %v504_v5 = vadd.f32 %v503_v1, %v487_v2  ;;  %v516_v6 = vmul.f32 %v487_v2, %v487_v2 }
  0xd7   :  { %778 = vst [vmem:[%s999_s3 + $0x10] sm:$0xff] %v775_v4   ;;  %v505_v7 = vrot.slane %v504_v5, 4  ;;  %v521_v8 = vadd.f32 %v520_v3, %v516_v6 }
  0xd9   :  { %v506_v9 = vadd.f32 %v505_v7, %v504_v5  ;;  %v522_v10 = vrot.slane %v521_v8, 4 }
  0xdb   :  { %v507_v11 = vrot.slane %v506_v9, 2  ;;  %v523_v12 = vadd.f32 %v522_v10, %v521_v8 }
  0xdd   :  { %v508_v13 = vadd.f32 %v507_v11, %v506_v9  ;;  %v524_v14 = vrot.slane %v523_v12, 2 }
  0xdf   :  { %v509_v15 = vrot.slane %v508_v13, 1  ;;  %v525_v17 = vadd.f32 %v524_v14, %v523_v12 }
  0xe1   :  { %v510_v18 = vadd.f32 %v509_v15, %v508_v13  ;;  %v526_v16 = vrot.slane %v525_v17, 1 }
  0xe3   :  { %v527_v19 = vadd.f32 %v526_v16, %v525_v17  ;;  %528 = vst [vmem:[%s1000_s4] sm:$0xff] %v510_v18 }
  0xe5   :  { %529 = vst [vmem:[%s1001_s5] sm:$0xff] %v527_v19 }

// kernel: tile.13
= control target key start
LH: loop header
LB: loop body
LE: loop exit
PB: predicated region body
PF: predicated region fallthrough
CT: control target
= control target key end

     0   :  { %s22_s0 = inlined_call_operand.vmem [shape: f32[128], index: 0, kind: input, shape index: {}]   ;;  %s23_s1 = inlined_call_operand.vmem [shape: f32[4,128], index: 1, kind: output, shape index: {}]  }
   0x1   :  { %v4_v0 = vld [vmem:[%s22_s0] ss:$0 sm:$0xff] }
   0x2   :  { %5 = vst [vmem:[%s23_s1] sm:$0xf] %v4_v0 }

// kernel: discriminator_forward.8
= control target key start
LH: loop header
LB: loop body
LE: loop exit
PB: predicated region body
PF: predicated region fallthrough
CT: control target
= control target key end

     0   :  { %s1237_s1 = inlined_call_operand.vmem [shape: bf16[896,128], index: 1, kind: input, shape index: {}]   ;;  %s1238_s0 = inlined_call_operand.vmem [shape: bf16[16,896], index: 0, kind: input, shape index: {}]   ;;  %s1239_s2 = inlined_call_operand.vmem [shape: f32[1,128], index: 2, kind: input, shape index: {}]   ;;  %s1240_s3 = inlined_call_operand.vmem [shape: bf16[16,128], index: 3, kind: output, shape index: {0}]   ;;  %s1241_s4 = inlined_call_operand.vmem [shape: f32[8,128], index: 4, kind: output, shape index: {1}]   ;;  %s1242_s5 = inlined_call_operand.vmem [shape: f32[8,128], index: 5, kind: output, shape index: {2}]  }
   0x1   :  { %v930_v0 = vld [vmem:[%s1237_s1 + $0x38] sm:$0xff]  ;;  %v929_v3 = vld [vmem:[%s1237_s1 + $0x30] sm:$0xff]  ;;  %v928_v8 = vld [vmem:[%s1237_s1 + $0x28] sm:$0xff] }
   0x2   :  { %v938_v1 = vld [vmem:[%s1237_s1 + $0x78] sm:$0xff]  ;;  %517 = vmatpush.bf16.msra.mxu0 %v930_v0  ;;  %v937_v4 = vld [vmem:[%s1237_s1 + $0x70] sm:$0xff]  ;;  %v936_v9 = vld [vmem:[%s1237_s1 + $0x68] sm:$0xff] }
   0x3   :  { %v946_v2 = vld [vmem:[%s1237_s1 + $0xb8] sm:$0xff]  ;;  %531 = vmatpush.bf16.msra.mxu1 %v938_v1  ;;  %v945_v6 = vld [vmem:[%s1237_s1 + $0xb0] sm:$0xff]  ;;  %v944_v10 = vld [vmem:[%s1237_s1 + $0xa8] sm:$0xff] }
   0x4   :  { %v954_v5 = vld [vmem:[%s1237_s1 + $0xf8] sm:$0xff]  ;;  %545 = vmatpush.bf16.msra.mxu2 %v946_v2  ;;  %v953_v7 = vld [vmem:[%s1237_s1 + $0xf0] sm:$0xff]  ;;  %v952_v11 = vld [vmem:[%s1237_s1 + $0xe8] sm:$0xff] }
   0x5   :  { %559 = vmatpush.bf16.msra.mxu3 %v954_v5  ;;  %v927_v12 = vld [vmem:[%s1237_s1 + $0x20] sm:$0xff]  ;;  %v926_v16 = vld [vmem:[%s1237_s1 + $0x18] sm:$0xff]  ;;  %v925_v20 = vld [vmem:[%s1237_s1 + $0x10] sm:$0xff] }
   0x6   :  { %518 = vmatpush.bf16.msra.mxu0 %v929_v3  ;;  %v935_v13 = vld [vmem:[%s1237_s1 + $0x60] sm:$0xff]  ;;  %v934_v17 = vld [vmem:[%s1237_s1 + $0x58] sm:$0xff]  ;;  %v933_v21 = vld [vmem:[%s1237_s1 + $0x50] sm:$0xff] }
   0x7   :  { %532 = vmatpush.bf16.msra.mxu1 %v937_v4  ;;  %v943_v14 = vld [vmem:[%s1237_s1 + $0xa0] sm:$0xff]  ;;  %v942_v18 = vld [vmem:[%s1237_s1 + $0x98] sm:$0xff]  ;;  %v941_v22 = vld [vmem:[%s1237_s1 + $0x90] sm:$0xff] }
   0x8   :  { %546 = vmatpush.bf16.msra.mxu2 %v945_v6  ;;  %v951_v15 = vld [vmem:[%s1237_s1 + $0xe0] sm:$0xff]  ;;  %v950_v19 = vld [vmem:[%s1237_s1 + $0xd8] sm:$0xff]  ;;  %v949_v23 = vld [vmem:[%s1237_s1 + $0xd0] sm:$0xff] }
   0x9   :  { %560 = vmatpush.bf16.msra.mxu3 %v953_v7  ;;  %v924_v24 = vld [vmem:[%s1237_s1 + $0x8] sm:$0xff]  ;;  %v923_v27 = vld [vmem:[%s1237_s1] sm:$0xff]  ;;  %v962_v31 = vld [vmem:[%s1237_s1 + $0x138] sm:$0xff] }
   0xa   :  { %519 = vmatpush.bf16.msra.mxu0 %v928_v8  ;;  %v932_v25 = vld [vmem:[%s1237_s1 + $0x48] sm:$0xff]  ;;  %v931_v29 = vld [vmem:[%s1237_s1 + $0x40] sm:$0xff]  ;;  %v919_v34 = vld [vmem:[%s1238_s0 + $0x18] sm:$0xf0] }
   0xb   :  { %533 = vmatpush.bf16.msra.mxu1 %v936_v9  ;;  %v940_v26 = vld [vmem:[%s1237_s1 + $0x88] sm:$0xff]  ;;  %v939_v30 = vld [vmem:[%s1237_s1 + $0x80] sm:$0xff]  ;;  %v970_v38 = vld [vmem:[%s1237_s1 + $0x178] sm:$0xff] }
   0xc   :  { %547 = vmatpush.bf16.msra.mxu2 %v944_v10  ;;  %v948_v28 = vld [vmem:[%s1237_s1 + $0xc8] sm:$0xff]  ;;  %v666_v33 = vld [vmem:[%s1238_s0] sm:$0xf]  ;;  %v920_v35 = vld [vmem:[%s1238_s0 + $0x20] sm:$0xf0] }
   0xd   :  { %561 = vmatpush.bf16.msra.mxu3 %v952_v11  ;;  %v674_v32 = vld [vmem:[%s1238_s0 + $0x8] sm:$0xf]  ;;  %v916_v36 = vld [vmem:[%s1238_s0 + $0x4] sm:$0xf]  ;;  %v668_v37 = vld [vmem:[%s1238_s0 + $0x1c] sm:$0xf0]  ;;  %v667_v41 = vor.u32 %v919_v34, %v666_v33 }
   0xe   :  { %520 = vmatpush.bf16.msra.mxu0 %v927_v12  ;;  %v978_v39 = vld [vmem:[%s1237_s1 + $0x1b8] sm:$0xff]  ;;  %v947_v40 = vld [vmem:[%s1237_s1 + $0xc0] sm:$0xff]  ;;  %v675_v42 = vor.u32 %v920_v35, %v674_v32  ;;  %v917_v43 = vld [vmem:[%s1238_s0 + $0xc] sm:$0xf]  ;;  %v671_v45 = vor.u32 %v916_v36, %v668_v37 }
   0xf   :  { %534 = vmatpush.bf16.msra.mxu1 %v935_v13  ;;  %v676_v44 = vld [vmem:[%s1238_s0 + $0x24] sm:$0xf0]  ;;  %v961_v46 = vld [vmem:[%s1237_s1 + $0x130] sm:$0xff]  ;;  %v959_v53 = vld [vmem:[%s1237_s1 + $0x120] sm:$0xff] }
  0x10   :  { %548 = vmatpush.bf16.msra.mxu2 %v943_v14  ;;  %v969_v47 = vld [vmem:[%s1237_s1 + $0x170] sm:$0xff]  ;;  %v679_v49 = vor.u32 %v917_v43, %v676_v44  ;;  %v960_v50 = vld [vmem:[%s1237_s1 + $0x128] sm:$0xff]  ;;  %v967_v54 = vld [vmem:[%s1237_s1 + $0x160] sm:$0xff] }
  0x11   :  { %562 = vmatpush.bf16.msra.mxu3 %v951_v15  ;;  %v977_v48 = vld [vmem:[%s1237_s1 + $0x1b0] sm:$0xff]  ;;  %v968_v51 = vld [vmem:[%s1237_s1 + $0x168] sm:$0xff]  ;;  %v975_v55 = vld [vmem:[%s1237_s1 + $0x1a0] sm:$0xff] }
  0x12   :  { %521 = vmatpush.bf16.msra.mxu0 %v926_v16  ;;  %v976_v52 = vld [vmem:[%s1237_s1 + $0x1a8] sm:$0xff]  ;;  %v958_v56 = vld [vmem:[%s1237_s1 + $0x118] sm:$0xff]  ;;  %v957_v59 = vld [vmem:[%s1237_s1 + $0x110] sm:$0xff] }
  0x13   :  { %535 = vmatpush.bf16.msra.mxu1 %v934_v17  ;;  %v966_v57 = vld [vmem:[%s1237_s1 + $0x158] sm:$0xff]  ;;  %v965_v60 = vld [vmem:[%s1237_s1 + $0x150] sm:$0xff]  ;;  %v956_v62 = vld [vmem:[%s1237_s1 + $0x108] sm:$0xff] }
  0x14   :  { %549 = vmatpush.bf16.msra.mxu2 %v942_v18  ;;  %v974_v58 = vld [vmem:[%s1237_s1 + $0x198] sm:$0xff]  ;;  %v973_v61 = vld [vmem:[%s1237_s1 + $0x190] sm:$0xff]  ;;  %v964_v63 = vld [vmem:[%s1237_s1 + $0x148] sm:$0xff] }
  0x15   :  { %563 = vmatpush.bf16.msra.mxu3 %v950_v19  ;;  %v972_v0 = vld [vmem:[%s1237_s1 + $0x188] sm:$0xff]  ;;  %v955_v1 = vld [vmem:[%s1237_s1 + $0x100] sm:$0xff]  ;;  %v682_v4 = vld [vmem:[%s1238_s0 + $0x10] sm:$0xf] }
  0x16   :  { %522 = vmatpush.bf16.msra.mxu0 %v925_v20  ;;  %v963_v2 = vld [vmem:[%s1237_s1 + $0x140] sm:$0xff]  ;;  %v921_v5 = vld [vmem:[%s1238_s0 + $0x28] sm:$0xf0]  ;;  %v918_v6 = vld [vmem:[%s1238_s0 + $0x14] sm:$0xf] }
  0x17   :  { %536 = vmatpush.bf16.msra.mxu1 %v933_v21  ;;  %v971_v3 = vld [vmem:[%s1237_s1 + $0x180] sm:$0xff]  ;;  %v684_v7 = vld [vmem:[%s1238_s0 + $0x2c] sm:$0xf0]  ;;  %v690_v8 = vld [vmem:[%s1238_s0 + $0x18] sm:$0xf]  ;;  %v683_v10 = vor.u32 %v921_v5, %v682_v4 }
  0x18   :  { %550 = vmatpush.bf16.msra.mxu2 %v941_v22  ;;  %v922_v9 = vld [vmem:[%s1238_s0 + $0x30] sm:$0xf0]  ;;  %v687_v11 = vor.u32 %v918_v6, %v684_v7  ;;  %v984_v35 = vld [vmem:[%s1239_s2] ss:$0 sm:$0xff] }
  0x19   :  { %564 = vmatpush.bf16.msra.mxu3 %v949_v23  ;;  %v691_v12 = vor.u32 %v922_v9, %v690_v8 }
  0x1a   :  { %523 = vmatpush.bf16.msra.mxu0 %v924_v24 }
  0x1b   :  { %537 = vmatpush.bf16.msra.mxu1 %v932_v25 }
  0x1c   :  { %551 = vmatpush.bf16.msra.mxu2 %v940_v26 }
  0x1d   :  { %565 = vmatpush.bf16.msra.mxu3 %v948_v28 }
  0x1e   :  { %524 = vmatpush.bf16.msra.mxu0 %v923_v27 }
  0x1f   :  { %538 = vmatpush.bf16.msra.mxu1 %v931_v29 }
  0x20   :  { %552 = vmatpush.bf16.msra.mxu2 %v939_v30 }
  0x21   :  { %566 = vmatpush.bf16.msra.mxu3 %v947_v40  ;;  %525 = vmatmul.bf16.vlgmr.msra.gmra.mxu0 %v667_v41 }
  0x22   :  { %573 = vmatpush.bf16.msrb.mxu0 %v962_v31  ;;  %539 = vmatmul.bf16.vlgmr.msra.gmra.mxu1 %v671_v45 }
  0x23   :  { %587 = vmatpush.bf16.msrb.mxu1 %v970_v38  ;;  %553 = vmatmul.bf16.vlgmr.msra.gmra.mxu2 %v675_v42 }
  0x24   :  { %601 = vmatpush.bf16.msrb.mxu2 %v978_v39  ;;  %567 = vmatmul.bf16.vlgmr.msra.gmra.mxu3 %v679_v49 }
  0x26   :  { %574 = vmatpush.bf16.msrb.mxu0 %v961_v46 }
  0x27   :  { %588 = vmatpush.bf16.msrb.mxu1 %v969_v47 }
  0x28   :  { %602 = vmatpush.bf16.msrb.mxu2 %v977_v48 }
  0x2a   :  { %575 = vmatpush.bf16.msrb.mxu0 %v960_v50 }
  0x2b   :  { %589 = vmatpush.bf16.msrb.mxu1 %v968_v51 }
  0x2c   :  { %603 = vmatpush.bf16.msrb.mxu2 %v976_v52 }
  0x2e   :  { %576 = vmatpush.bf16.msrb.mxu0 %v959_v53 }
  0x2f   :  { %590 = vmatpush.bf16.msrb.mxu1 %v967_v54 }
  0x30   :  { %604 = vmatpush.bf16.msrb.mxu2 %v975_v55 }
  0x32   :  { %577 = vmatpush.bf16.msrb.mxu0 %v958_v56 }
  0x33   :  { %591 = vmatpush.bf16.msrb.mxu1 %v966_v57 }
  0x34   :  { %605 = vmatpush.bf16.msrb.mxu2 %v974_v58 }
  0x36   :  { %578 = vmatpush.bf16.msrb.mxu0 %v957_v59 }
  0x37   :  { %592 = vmatpush.bf16.msrb.mxu1 %v965_v60 }
  0x38   :  { %606 = vmatpush.bf16.msrb.mxu2 %v973_v61 }
  0x3a   :  { %579 = vmatpush.bf16.msrb.mxu0 %v956_v62 }
  0x3b   :  { %593 = vmatpush.bf16.msrb.mxu1 %v964_v63 }
  0x3c   :  { %607 = vmatpush.bf16.msrb.mxu2 %v972_v0 }
  0x3e   :  { %580 = vmatpush.bf16.msrb.mxu0 %v955_v1 }
  0x3f   :  { %594 = vmatpush.bf16.msrb.mxu1 %v963_v2 }
  0x40   :  { %608 = vmatpush.bf16.msrb.mxu2 %v971_v3 }
  0x41   :  { %581 = vmatmul.bf16.vlgmr.msrb.gmra.mxu0 %v683_v10 }
  0x42   :  { %595 = vmatmul.bf16.vlgmr.msrb.gmra.mxu1 %v687_v11 }
  0x43   :  { %609 = vmatmul.bf16.vlgmr.msrb.gmra.mxu2 %v691_v12 }
  0x9e   :  { %v526_v13 = vpop.f32.mrf.mxu0 }
  0x9f   :  { %v540_v14 = vpop.f32.mrf.mxu1 }
  0xa0   :  { %v541_v19 = vadd.f32 %v540_v14, %v526_v13 }
  0xa6   :  { %v554_v15 = vpop.f32.mrf.mxu2  ;;  %v528_v16 = vpop.f32.mrf.mxu0 }
  0xa7   :  { %v568_v17 = vpop.f32.mrf.mxu3  ;;  %v542_v18 = vpop.f32.mrf.mxu1  ;;  %v555_v21 = vadd.f32 %v554_v15, %v541_v19 }
  0xa8   :  { %v543_v22 = vadd.f32 %v542_v18, %v528_v16 }
  0xa9   :  { %v569_v25 = vadd.f32 %v568_v17, %v555_v21 }
  0xae   :  { %v556_v20 = vpop.f32.mrf.mxu2 }
  0xaf   :  { %v557_v26 = vadd.f32 %v556_v20, %v543_v22  ;;  %v570_v27 = vpop.f32.mrf.mxu3 }
  0xb1   :  { %v571_v30 = vadd.f32 %v570_v27, %v557_v26 }
  0xbe   :  { %v582_v23 = vpop.f32.mrf.mxu0 }
  0xbf   :  { %v596_v24 = vpop.f32.mrf.mxu1  ;;  %v583_v28 = vadd.f32 %v582_v23, %v569_v25 }
  0xc1   :  { %v597_v32 = vadd.f32 %v596_v24, %v583_v28 }
  0xc6   :  { %v610_v29 = vpop.f32.mrf.mxu2  ;;  %v584_v31 = vpop.f32.mrf.mxu0 }
  0xc7   :  { %v585_v33 = vadd.f32 %v584_v31, %v571_v30  ;;  %v611_v34 = vadd.f32 %v610_v29, %v597_v32  ;;  %v598_v36 = vpop.f32.mrf.mxu1 }
  0xc9   :  { %v599_v37 = vadd.f32 %v598_v36, %v585_v33  ;;  %v628_v39 = vadd.f32 %v984_v35, %v611_v34 }
  0xcb   :  { %v641_v42 = vmul.f32 %v628_v39, %v628_v39 }
  0xce   :  { %v612_v38 = vpop.f32.mrf.mxu2 }
  0xcf   :  { %v613_v40 = vadd.f32 %v612_v38, %v599_v37 }
  0xd1   :  { %v629_v41 = vadd.f32 %v984_v35, %v613_v40 }
  0xd3   :  { %v982_v43 = vpack.c.bf16 %v629_v41, %v628_v39  ;;  %v634_v44 = vadd.f32 %v629_v41, %v628_v39  ;;  %v642_v45 = vmul.f32 %v629_v41, %v629_v41 }
  0xd5   :  { %983 = vst [vmem:[%s1240_s3] sm:$0xff] %v982_v43   ;;  %v635_v46 = vrot.slane %v634_v44, 4  ;;  %v643_v47 = vadd.f32 %v642_v45, %v641_v42 }
  0xd7   :  { %v636_v48 = vadd.f32 %v635_v46, %v634_v44  ;;  %v644_v49 = vrot.slane %v643_v47, 4 }
  0xd9   :  { %v637_v50 = vrot.slane %v636_v48, 2  ;;  %v645_v51 = vadd.f32 %v644_v49, %v643_v47 }
  0xdb   :  { %v638_v52 = vadd.f32 %v637_v50, %v636_v48  ;;  %v646_v53 = vrot.slane %v645_v51, 2 }
  0xdd   :  { %v639_v54 = vrot.slane %v638_v52, 1  ;;  %v647_v55 = vadd.f32 %v646_v53, %v645_v51 }
  0xdf   :  { %v640_v56 = vadd.f32 %v639_v54, %v638_v52  ;;  %v648_v57 = vrot.slane %v647_v55, 1 }
  0xe1   :  { %v649_v58 = vadd.f32 %v648_v57, %v647_v55  ;;  %650 = vst [vmem:[%s1241_s4] sm:$0xff] %v640_v56 }
  0xe3   :  { %651 = vst [vmem:[%s1242_s5] sm:$0xff] %v649_v58 }

// kernel: discriminator_forward.9
= control target key start
LH: loop header
LB: loop body
LE: loop exit
PB: predicated region body
PF: predicated region fallthrough
CT: control target
= control target key end

     0   :  { %vm42_vm0 = vcmask 1043456   ;;  %s739_s3 = inlined_call_operand.vmem [shape: bf16[512,128], index: 3, kind: input, shape index: {}]   ;;  %s740_s0 = inlined_call_operand.vmem [shape: bf16[3,512], index: 0, kind: input, shape index: {}]   ;;  %s741_s1 = inlined_call_operand.vmem [shape: f32[1,512], index: 1, kind: input, shape index: {}]   ;;  %s742_s2 = inlined_call_operand.vmem [shape: f32[1,512], index: 2, kind: input, shape index: {}]   ;;  %s743_s4 = inlined_call_operand.vmem [shape: f32[1,128], index: 4, kind: input, shape index: {}]   ;;  %s744_s5 = inlined_call_operand.vmem [shape: f32[3,128], index: 5, kind: output, shape index: {0}]   ;;  %s745_s6 = inlined_call_operand.vmem [shape: f32[3,128], index: 6, kind: output, shape index: {1}]  }
   0x1   :  { %v549_v0 = vld [vmem:[%s739_s3 + $0x38] sm:$0xff]  ;;  %v548_v4 = vld [vmem:[%s739_s3 + $0x30] sm:$0xff]  ;;  %v547_v8 = vld [vmem:[%s739_s3 + $0x28] sm:$0xff] }
   0x2   :  { %v557_v1 = vld [vmem:[%s739_s3 + $0x78] sm:$0xff]  ;;  %343 = vmatpush.bf16.msra.mxu0 %v549_v0  ;;  %v556_v5 = vld [vmem:[%s739_s3 + $0x70] sm:$0xff]  ;;  %v555_v9 = vld [vmem:[%s739_s3 + $0x68] sm:$0xff] }
   0x3   :  { %v565_v2 = vld [vmem:[%s739_s3 + $0xb8] sm:$0xff]  ;;  %356 = vmatpush.bf16.msra.mxu1 %v557_v1  ;;  %v564_v6 = vld [vmem:[%s739_s3 + $0xb0] sm:$0xff]  ;;  %v563_v10 = vld [vmem:[%s739_s3 + $0xa8] sm:$0xff] }
   0x4   :  { %v573_v3 = vld [vmem:[%s739_s3 + $0xf8] sm:$0xff]  ;;  %369 = vmatpush.bf16.msra.mxu2 %v565_v2  ;;  %v572_v7 = vld [vmem:[%s739_s3 + $0xf0] sm:$0xff]  ;;  %v571_v11 = vld [vmem:[%s739_s3 + $0xe8] sm:$0xff] }
   0x5   :  { %382 = vmatpush.bf16.msra.mxu3 %v573_v3  ;;  %v546_v12 = vld [vmem:[%s739_s3 + $0x20] sm:$0xff]  ;;  %v545_v28 = vld [vmem:[%s739_s3 + $0x18] sm:$0xff]  ;;  %v544_v42 = vld [vmem:[%s739_s3 + $0x10] sm:$0xff] }
   0x6   :  { %344 = vmatpush.bf16.msra.mxu0 %v548_v4  ;;  %v554_v13 = vld [vmem:[%s739_s3 + $0x60] sm:$0xff]  ;;  %v553_v29 = vld [vmem:[%s739_s3 + $0x58] sm:$0xff]  ;;  %v552_v43 = vld [vmem:[%s739_s3 + $0x50] sm:$0xff] }
   0x7   :  { %357 = vmatpush.bf16.msra.mxu1 %v556_v5  ;;  %v562_v14 = vld [vmem:[%s739_s3 + $0xa0] sm:$0xff]  ;;  %v561_v33 = vld [vmem:[%s739_s3 + $0x98] sm:$0xff]  ;;  %v560_v45 = vld [vmem:[%s739_s3 + $0x90] sm:$0xff] }
   0x8   :  { %370 = vmatpush.bf16.msra.mxu2 %v564_v6  ;;  %v31_v15 = vld [vmem:[%s740_s0] sm:$0xff]  ;;  %v569_v34 = vld [vmem:[%s739_s3 + $0xd8] sm:$0xff]  ;;  %v568_v46 = vld [vmem:[%s739_s3 + $0xd0] sm:$0xff] }
   0x9   :  { %383 = vmatpush.bf16.msra.mxu3 %v572_v7  ;;  %v570_v16 = vld [vmem:[%s739_s3 + $0xe0] sm:$0xff]  ;;  %v32_v17 = vunpack.c.l.bf16 %v31_v15  ;;  %v33_v32 = vunpack.c.h.bf16 %v31_v15  ;;  %v543_v50 = vld [vmem:[%s739_s3 + $0x8] sm:$0xff] }
   0xa   :  { %345 = vmatpush.bf16.msra.mxu0 %v547_v8  ;;  %v34_v18 = vld [vmem:[%s741_s1] sm:$0xf]  ;;  %v551_v51 = vld [vmem:[%s739_s3 + $0x48] sm:$0xff] }
   0xb   :  { %358 = vmatpush.bf16.msra.mxu1 %v555_v9  ;;  %v49_v19 = vld [vmem:[%s742_s2] sm:$0xf]  ;;  %v36_v20 = vperm.slane %v34_v18, 0  ;;  %v37_v21 = vperm.slane %v34_v18, 1  ;;  %v38_v24 = vperm.slane %v34_v18, 2  ;;  %v39_v25 = vperm.slane %v34_v18, 3 }
   0xc   :  { %371 = vmatpush.bf16.msra.mxu2 %v563_v10  ;;  %v51_v22 = vperm.slane %v49_v19, 0  ;;  %v52_v23 = vperm.slane %v49_v19, 1  ;;  %v53_v26 = vperm.slane %v49_v19, 2  ;;  %v54_v27 = vperm.slane %v49_v19, 3  ;;  %v559_v53 = vld [vmem:[%s739_s3 + $0x88] sm:$0xff]  ;;  %v542_v57 = vld [vmem:[%s739_s3] sm:$0xff] }
   0xd   :  { %384 = vmatpush.bf16.msra.mxu3 %v571_v11  ;;  %v40_v30 = vrot.slane %v37_v21, 4  ;;  %v41_v35 = vrot.slane %v39_v25, 4  ;;  %v567_v54 = vld [vmem:[%s739_s3 + $0xc8] sm:$0xff]  ;;  %v550_v58 = vld [vmem:[%s739_s3 + $0x40] sm:$0xff] }
   0xe   :  { %346 = vmatpush.bf16.msra.mxu0 %v546_v12  ;;  %v55_v31 = vrot.slane %v52_v23, 4  ;;  %v56_v36 = vrot.slane %v54_v27, 4  ;;  %v558_v59 = vld [vmem:[%s739_s3 + $0x80] sm:$0xff] }
   0xf   :  { %359 = vmatpush.bf16.msra.mxu1 %v554_v13  ;;  %v43_v37 = vsel %vm42_vm0, %v36_v20, %v40_v30  ;;  %v44_v40 = vsel %vm42_vm0, %v38_v24, %v41_v35  ;;  %v566_v60 = vld [vmem:[%s739_s3 + $0xc0] sm:$0xff] }
  0x10   :  { %372 = vmatpush.bf16.msra.mxu2 %v562_v14  ;;  %v57_v38 = vsel %vm42_vm0, %v51_v22, %v55_v31  ;;  %v47_v39 = vmul.f32 %v43_v37, %v32_v17  ;;  %v58_v41 = vsel %vm42_vm0, %v53_v26, %v56_v36  ;;  %v48_v44 = vmul.f32 %v44_v40, %v33_v32  ;;  %v574_v5 = vld [vmem:[%s743_s4] ss:$0 sm:$0xff] }
  0x11   :  { %385 = vmatpush.bf16.msra.mxu3 %v570_v16  ;;  %30 = vst [vmem:[%s744_s5] sm:$0x7] %v574_v5 }
  0x12   :  { %347 = vmatpush.bf16.msra.mxu0 %v545_v28  ;;  %v61_v47 = vadd.f32 %v57_v38, %v47_v39  ;;  %v62_v48 = vadd.f32 %v58_v41, %v48_v44 }
  0x13   :  { %360 = vmatpush.bf16.msra.mxu1 %v553_v29 }
  0x14   :  { %373 = vmatpush.bf16.msra.mxu2 %v561_v33  ;;  %vm63_vm1 = vcmp.ge.f32.partialorder %v61_v47, 0.0  ;;  %v65_v49 = vmul.f32 0.01, %v61_v47  ;;  %vm64_vm2 = vcmp.ge.f32.partialorder %v62_v48, 0.0  ;;  %v66_v52 = vmul.f32 0.01, %v62_v48 }
  0x15   :  { %386 = vmatpush.bf16.msra.mxu3 %v569_v34 }
  0x16   :  { %348 = vmatpush.bf16.msra.mxu0 %v544_v42  ;;  %v67_v55 = vsel %vm63_vm1, %v61_v47, %v65_v49  ;;  %v68_v56 = vsel %vm64_vm2, %v62_v48, %v66_v52 }
  0x17   :  { %361 = vmatpush.bf16.msra.mxu1 %v552_v43  ;;  %72 = vst [vmem:[#allocation1] ss:$2 sm:$0xff] %v67_v55 }
  0x18   :  { %374 = vmatpush.bf16.msra.mxu2 %v560_v45  ;;  %74 = vst [vmem:[#allocation1 + $0x10] ss:$2 sm:$0xff] %v68_v56  ;;  %v69_v14 = vld [vmem:[%s744_s5] sm:$0x7] }
  0x19   :  { %387 = vmatpush.bf16.msra.mxu3 %v568_v46 }
  0x1a   :  { %349 = vmatpush.bf16.msra.mxu0 %v543_v50 }
  0x1b   :  { %362 = vmatpush.bf16.msra.mxu1 %v551_v51 }
  0x1c   :  { %375 = vmatpush.bf16.msra.mxu2 %v559_v53 }
  0x1d   :  { %388 = vmatpush.bf16.msra.mxu3 %v567_v54 }
  0x1e   :  { %350 = vmatpush.bf16.msra.mxu0 %v542_v57  ;;  %v75_v61 = vld.sshfl [vmem:[#allocation1] sm:$0xff pattern:$0x75316420]  ;;  %v76_v62 = vld.sshfl [vmem:[#allocation1 + $0x8] sm:$0xff pattern:$0x75316420] }
  0x1f   :  { %363 = vmatpush.bf16.msra.mxu1 %v550_v58  ;;  %v83_v63 = vpack.c.bf16 %v75_v61, %v75_v61  ;;  %v84_v0 = vpack.c.bf16 %v76_v62, %v76_v62  ;;  %v77_v1 = vld.sshfl [vmem:[#allocation1 + $0x10] sm:$0xff pattern:$0x75316420]  ;;  %v78_v2 = vld.sshfl [vmem:[#allocation1 + $0x18] sm:$0xff pattern:$0x75316420] }
  0x20   :  { %376 = vmatpush.bf16.msra.mxu2 %v558_v59  ;;  %v85_v3 = vpack.c.bf16 %v77_v1, %v77_v1  ;;  %v86_v4 = vpack.c.bf16 %v78_v2, %v78_v2 }
  0x21   :  { %389 = vmatpush.bf16.msra.mxu3 %v566_v60  ;;  %351 = vmatmul.bf16.vlgmr.msra.gmra.mxu0 %v83_v63 }
  0x22   :  { %364 = vmatmul.bf16.vlgmr.msra.gmra.mxu1 %v84_v0 }
  0x23   :  { %377 = vmatmul.bf16.vlgmr.msra.gmra.mxu2 %v85_v3 }
  0x24   :  { %390 = vmatmul.bf16.vlgmr.msra.gmra.mxu3 %v86_v4 }
  0x9e   :  { %v352_v6 = vpop.f32.mrf.mxu0 }
  0x9f   :  { %v365_v7 = vpop.f32.mrf.mxu1 }
  0xa0   :  { %v366_v8 = vadd.f32 %v365_v7, %v352_v6 }
  0xa6   :  { %v378_v9 = vpop.f32.mrf.mxu2  ;;  %v354_v12 = vpop.f32.mrf.mxu0 }
  0xa7   :  { %v391_v10 = vpop.f32.mrf.mxu3  ;;  %v379_v11 = vadd.f32 %v378_v9, %v366_v8  ;;  %v367_v13 = vpop.f32.mrf.mxu1 }
  0xa9   :  { %v392_v15 = vadd.f32 %v391_v10, %v379_v11 }
  0xab   :  { %v395_v16 = vadd.f32 %v392_v15, %v69_v14 }
  0xad   :  { %396 = vst [vmem:[%s744_s5] sm:$0x7] %v395_v16 }
  0xae   :  { %v380_v17 = vpop.f32.mrf.mxu2 }
  0xaf   :  { %v393_v18 = vpop.f32.mrf.mxu3 }
  0xb4   :  { %v400_v19 = vld [vmem:[%s744_s5] sm:$0x7] }
  0xb5   :  { %v401_v20 = vmul.f32 0.5, %v400_v19 }
  0xb7   :  { %575 = vtanh.f32 %v401_v20 }
  0xbd   :  { %v576_v21 = vpop.eup %575 }
  0xbe   :  { %v403_v22 = vadd.f32 1.0, %v576_v21 }
  0xc0   :  { %v404_v23 = vmul.f32 0.5, %v403_v22 }
  0xc2   :  { %405 = vst [vmem:[%s745_s6] sm:$0x7] %v404_v23 }

</bundles_post_ra>
